<compile_context>
chip_gen: v7x
topology: tpu7x:2x2x1
jax: 0.10.0
libtpu: 0.0.40
codegen_flags: <defaults>
</compile_context>

<pallas_src>
import functools

import jax
import jax.numpy as jnp
from jax.experimental import pallas as pl
from jax.experimental.pallas import tpu as pltpu

EPS = 1e-5


def _round_up(x, m):
    return (x + m - 1) // m * m


def _pad_to(a, rows, cols):
    r, c = a.shape
    if (r, c) == (rows, cols):
        return a
    return jnp.pad(a, ((0, rows - r), (0, cols - c)))


def _unpad(a, rows, cols):
    if a.shape == (rows, cols):
        return a
    return a[:rows, :cols]


@functools.lru_cache(maxsize=None)
def _vmem_limit_bytes():
    """Scoped VMEM limit per generation: ~3/4 of physical, capped at 96 MiB.

    128-MiB parts (v5e/v6e) -> 96 MiB; v7x (64 MiB) -> 48 MiB.  Falls back to
    the v7x-safe 48 MiB if the hardware query is unavailable.
    """
    cap = 64 * 1024 * 1024
    try:
        info = pltpu.get_tpu_info()
        cap = int(getattr(info, "vmem_capacity_bytes", cap)) or cap
    except Exception:
        pass
    return min(96 * 1024 * 1024, (cap * 3) // 4)


def _choose_tm(m_real, kp, cp, vmem_limit):
    """Row-tile size: as large as the VMEM budget allows, but only grow past
    256 rows while nt >= 4 so the parallel M axis keeps both v7x cores busy."""
    m16 = _round_up(m_real, 16)            # dense bf16 sublane packing
    budget = int(vmem_limit * 0.55)        # headroom for compiler scratch
    fixed = 2 * kp * cp * 2                # double-buffered bf16 weight block

    base = min(256, m16)
    while base > 16:
        per_step = 2 * (base * kp + 2 * base * cp) * 2
        if fixed + per_step <= budget:
            break
        base //= 2

    tm = base
    for cand in (512, 768, 1024):
        if cand > m16:
            break
        per_step = 2 * (cand * kp + 2 * cand * cp) * 2
        nt = _round_up(m_real, cand) // cand
        if fixed + per_step > budget or nt < 4:
            break
        tm = cand
    return tm


# ---------------------------------------------------------------------------
# Pass 1: tiled conv (MXU, bf16 in / f32 acc) + per-tile BN partial sums.
# Output intermediate is written back as bf16 (HBM-bound pass).
# ---------------------------------------------------------------------------
def _conv_stats_kernel(p_ref, w_ref, y_ref, s_ref, q_ref):
    y = jnp.dot(p_ref[...], w_ref[...], preferred_element_type=jnp.float32)
    y_ref[...] = y.astype(y_ref.dtype)     # bf16 writeback
    # per-tile partial sums from the f32 accumulator (XLU, ~free next to MXU)
    s_ref[...] = jnp.sum(y, axis=0, keepdims=True)[None]
    q_ref[...] = jnp.sum(y * y, axis=0, keepdims=True)[None]


def conv_stats_pallas(patches_bf16, w_bf16, tm, vmem_limit):
    Mp, Kp = patches_bf16.shape
    Kp2, Cp = w_bf16.shape
    assert Kp == Kp2 and Mp % tm == 0
    nt = Mp // tm
    cost = pl.CostEstimate(
        flops=2 * Mp * Kp * Cp + 3 * Mp * Cp,
        transcendentals=0,
        bytes_accessed=(Mp * Kp + Kp * Cp + Mp * Cp) * 2 + 2 * nt * Cp * 4,
    )
    return pl.pallas_call(
        _conv_stats_kernel,
        out_shape=(
            jax.ShapeDtypeStruct((Mp, Cp), jnp.bfloat16),     # conv output
            jax.ShapeDtypeStruct((nt, 1, Cp), jnp.float32),   # per-tile sum
            jax.ShapeDtypeStruct((nt, 1, Cp), jnp.float32),   # per-tile sum sq
        ),
        grid=(nt,),
        in_specs=[
            pl.BlockSpec((tm, Kp), lambda i: (i, 0)),
            pl.BlockSpec((Kp, Cp), lambda i: (0, 0)),         # resident weight
        ],
        out_specs=(
            pl.BlockSpec((tm, Cp), lambda i: (i, 0)),
            pl.BlockSpec((1, 1, Cp), lambda i: (i, 0, 0)),
            pl.BlockSpec((1, 1, Cp), lambda i: (i, 0, 0)),
        ),
        compiler_params=pltpu.CompilerParams(
            dimension_semantics=("parallel",),
            vmem_limit_bytes=vmem_limit,
        ),
        cost_estimate=cost,
    )(patches_bf16, w_bf16)


# ---------------------------------------------------------------------------
# Pass 2: tiled BN-apply (folded scale/shift) + optional residual + ReLU.
# bf16 in / bf16 out; the math (and the residual add) runs in f32 in-register.
# ---------------------------------------------------------------------------
def _make_bn_apply_kernel(apply_relu: bool, has_residual: bool):
    def kernel(y_ref, sc_ref, sh_ref, *rest):
        if has_residual:
            r_ref, o_ref = rest
        else:
            (o_ref,) = rest
        out = y_ref[...].astype(jnp.float32) * sc_ref[...] + sh_ref[...]
        if has_residual:
            out = out + r_ref[...].astype(jnp.float32)
        if apply_relu:
            out = jnp.maximum(out, 0.0)
        o_ref[...] = out.astype(o_ref.dtype)

    return kernel


def bn_apply_pallas(y, scale, shift, tm, vmem_limit, *, relu, residual=None):
    Mp, Cp = y.shape
    assert Mp % tm == 0
    nt = Mp // tm
    inputs = [y, scale.reshape(1, Cp), shift.reshape(1, Cp)]
    in_specs = [
        pl.BlockSpec((tm, Cp), lambda i: (i, 0)),
        pl.BlockSpec((1, Cp), lambda i: (0, 0)),
        pl.BlockSpec((1, Cp), lambda i: (0, 0)),
    ]
    if residual is not None:
        inputs.append(residual)
        in_specs.append(pl.BlockSpec((tm, Cp), lambda i: (i, 0)))
    n_big = 3 if residual is not None else 2
    cost = pl.CostEstimate(
        flops=(4 if residual is not None else 3) * Mp * Cp,
        transcendentals=0,
        bytes_accessed=n_big * Mp * Cp * 2 + 2 * Cp * 4,
    )
    kernel = _make_bn_apply_kernel(relu, residual is not None)
    return pl.pallas_call(
        kernel,
        out_shape=jax.ShapeDtypeStruct((Mp, Cp), jnp.bfloat16),
        grid=(nt,),
        in_specs=in_specs,
        out_specs=pl.BlockSpec((tm, Cp), lambda i: (i, 0)),
        compiler_params=pltpu.CompilerParams(
            dimension_semantics=("parallel",),
            vmem_limit_bytes=vmem_limit,
        ),
        cost_estimate=cost,
    )(*inputs)


# ---------------------------------------------------------------------------
# Fused conv + training-mode BatchNorm (+residual, +ReLU) building block
# ---------------------------------------------------------------------------
def fused_conv_bn(patches, w_mat, gamma, beta, *, m_real, tm, vmem_limit,
                  relu, residual=None):
    """patches: (m_real, K) bf16; w_mat: (K, Cout). Returns padded (Mp, Cp) bf16."""
    K, Cout = w_mat.shape
    Kp = _round_up(K, 128)
    Cp = _round_up(Cout, 128)
    Mp = _round_up(m_real, tm)

    if patches.dtype != jnp.bfloat16:
        patches = patches.astype(jnp.bfloat16)
    p = _pad_to(patches, Mp, Kp)
    w = _pad_to(w_mat.astype(jnp.bfloat16), Kp, Cp)

    y, s, q = conv_stats_pallas(p, w, tm, vmem_limit)

    # Global batch statistics from per-tile partial sums (padded rows are
    # exact zeros -> contribute nothing; divide by the *real* row count).
    # TODO(synk): E[y^2]-E[y]^2 can cancel when |mean| >> std at very large
    # N*Ho*Wo; switch to per-tile centered (Welford) combine if that bites.
    tot = jnp.sum(s, axis=0)[0]
    tot_sq = jnp.sum(q, axis=0)[0]
    mean = tot / m_real
    var = jnp.maximum(tot_sq / m_real - mean * mean, 0.0)

    g = _pad_to(gamma.reshape(1, -1).astype(jnp.float32), 1, Cp)[0]
    b = _pad_to(beta.reshape(1, -1).astype(jnp.float32), 1, Cp)[0]
    scale = g * jax.lax.rsqrt(var + EPS)
    shift = b - mean * scale

    res_p = None
    if residual is not None:
        res_p = _pad_to(residual.astype(jnp.bfloat16), Mp, Cp)

    out = bn_apply_pallas(y, scale, shift, tm, vmem_limit, relu=relu,
                          residual=res_p)
    return out, Cp


# ---------------------------------------------------------------------------
# Glue: im2col / weight reshaping (plain JAX, now bf16 end-to-end)
# ---------------------------------------------------------------------------
def im2col(x_nhwc, ksize, stride, padding):
    N, H, W, C = x_nhwc.shape
    xp = jnp.pad(x_nhwc, ((0, 0), (padding, padding), (padding, padding), (0, 0)))
    Ho = (H + 2 * padding - ksize) // stride + 1
    Wo = (W + 2 * padding - ksize) // stride + 1
    taps = [
        xp[:, kh: kh + stride * Ho: stride, kw: kw + stride * Wo: stride, :]
        for kh in range(ksize)
        for kw in range(ksize)
    ]
    p = jnp.stack(taps, axis=3)  # (N, Ho, Wo, k*k, C)
    return p.reshape(N * Ho * Wo, ksize * ksize * C), (N, Ho, Wo)


def torch_weight_to_matrix(w_oihw):
    """(Cout, Cin, kh, kw) -> (kh*kw*Cin, Cout), matching im2col tap order."""
    Cout, Cin, kh, kw = w_oihw.shape
    return jnp.transpose(w_oihw, (2, 3, 1, 0)).reshape(kh * kw * Cin, Cout)


# ---------------------------------------------------------------------------
# BasicBlock forward (NHWC bf16 core + thin NCHW wrapper)
# ---------------------------------------------------------------------------
def basic_block_forward_nhwc(x, params, stride):
    """x: (N, H, W, Cin) bf16 NHWC.  Returns (N, Ho, Wo, Cout) bf16 NHWC."""
    N, H, W, Cin = x.shape
    Cout = params["conv1_w"].shape[0]

    # conv1 (3x3, stride) + bn1 + relu
    p1, (_, Ho, Wo) = im2col(x, 3, stride, 1)
    M = N * Ho * Wo

    kp_max = _round_up(9 * max(Cin, Cout), 128)
    cp = _round_up(Cout, 128)
    vmem_limit = _vmem_limit_bytes()
    tm = _choose_tm(M, kp_max, cp, vmem_limit)

    w1 = torch_weight_to_matrix(params["conv1_w"])
    out1, _ = fused_conv_bn(p1, w1, params["bn1_g"], params["bn1_b"],
                            m_real=M, tm=tm, vmem_limit=vmem_limit, relu=True)

    # shortcut (bf16 residual consumed by conv2's BN-apply pass)
    if stride != 1 or Cin != Cout:
        xs = x[:, ::stride, ::stride, :].reshape(M, Cin)
        ws = torch_weight_to_matrix(params["sc_w"])
        identity, _ = fused_conv_bn(xs, ws, params["sc_bn_g"], params["sc_bn_b"],
                                    m_real=M, tm=tm, vmem_limit=vmem_limit,
                                    relu=False)
    else:
        identity = x.reshape(M, Cin)

    # conv2 (3x3, stride 1) + bn2 + residual add + relu.  out1 is bf16, so the
    # second im2col reads/writes half the bytes of the old f32 path.
    o1 = _unpad(out1, M, Cout).reshape(N, Ho, Wo, Cout)
    p2, _ = im2col(o1, 3, 1, 1)
    w2 = torch_weight_to_matrix(params["conv2_w"])
    out2, _ = fused_conv_bn(p2, w2, params["bn2_g"], params["bn2_b"],
                            m_real=M, tm=tm, vmem_limit=vmem_limit,
                            relu=True, residual=identity)

    return _unpad(out2, M, Cout).reshape(N, Ho, Wo, Cout)


def basic_block_forward(x_nchw, params, stride):
    # Thin PyTorch-layout wrapper: chained blocks should call the NHWC entry
    # point directly and convert layout only at network entry/exit.
    x = jnp.transpose(x_nchw, (0, 2, 3, 1)).astype(jnp.bfloat16)
    out = basic_block_forward_nhwc(x, params, stride)
    return jnp.transpose(out, (0, 3, 1, 2)).astype(jnp.float32)


# ---------------------------------------------------------------------------
# Pure-JAX reference (f32, HIGHEST precision) for correctness check
# ---------------------------------------------------------------------------
def _ref_conv(x_nhwc, w_oihw, stride, padding):
    return jax.lax.conv_general_dilated(
        x_nhwc,
        jnp.transpose(w_oihw, (2, 3, 1, 0)),
        window_strides=(stride, stride),
        padding=[(padding, padding), (padding, padding)],
        dimension_numbers=("NHWC", "HWIO", "NHWC"),
        precision=jax.lax.Precision.HIGHEST,
    )


def _ref_bn(y, g, b):
    m = y.mean(axis=(0, 1, 2), keepdims=True)
    v = ((y - m) ** 2).mean(axis=(0, 1, 2), keepdims=True)
    return (y - m) * jax.lax.rsqrt(v + EPS) * g.reshape(1, 1, 1, -1) + b.reshape(
        1, 1, 1, -1
    )


def basic_block_reference(x_nchw, params, stride):
    x = jnp.transpose(x_nchw, (0, 2, 3, 1))
    Cin, Cout = x.shape[-1], params["conv1_w"].shape[0]
    out = _ref_conv(x, params["conv1_w"], stride, 1)
    out = jnp.maximum(_ref_bn(out, params["bn1_g"], params["bn1_b"]), 0.0)
    out = _ref_conv(out, params["conv2_w"], 1, 1)
    out = _ref_bn(out, params["bn2_g"], params["bn2_b"])
    if stride != 1 or Cin != Cout:
        idn = _ref_conv(x, params["sc_w"], stride, 0)
        idn = _ref_bn(idn, params["sc_bn_g"], params["sc_bn_b"])
    else:
        idn = x
    out = jnp.maximum(out + idn, 0.0)
    return jnp.transpose(out, (0, 3, 1, 2))


# ---------------------------------------------------------------------------
# Deterministic parameter init (shapes from BasicBlock.__init__)
# ---------------------------------------------------------------------------
def init_params(key, in_channels, out_channels, stride):
    k1, k2, k3 = jax.random.split(key, 3)
    fan1 = in_channels * 9
    fan2 = out_channels * 9
    params = {
        "conv1_w": jax.random.normal(k1, (out_channels, in_channels, 3, 3), jnp.float32)
        * (2.0 / fan1) ** 0.5,
        "bn1_g": jnp.ones((out_channels,), jnp.float32),
        "bn1_b": jnp.zeros((out_channels,), jnp.float32),
        "conv2_w": jax.random.normal(k2, (out_channels, out_channels, 3, 3), jnp.float32)
        * (2.0 / fan2) ** 0.5,
        "bn2_g": jnp.ones((out_channels,), jnp.float32),
        "bn2_b": jnp.zeros((out_channels,), jnp.float32),
    }
    if stride != 1 or in_channels != out_channels:
        params["sc_w"] = jax.random.normal(
            k3, (out_channels, in_channels, 1, 1), jnp.float32
        ) * (2.0 / in_channels) ** 0.5
        params["sc_bn_g"] = jnp.ones((out_channels,), jnp.float32)
        params["sc_bn_b"] = jnp.zeros((out_channels,), jnp.float32)
    return params


if __name__ == "__main__":
    key = jax.random.PRNGKey(0)

    # (batch, in_ch, out_ch, spatial, stride):
    #   1) projection shortcut (1x1 conv + BN), stride 1
    #   2) identity shortcut
    #   3) projection shortcut with stride 2
    configs = [(2, 4, 8, 16, 1), (2, 8, 8, 16, 1), (2, 4, 8, 16, 2)]

    for batch, in_ch, out_ch, spatial, stride in configs:
        key, kx, kp = jax.random.split(key, 3)
        x = jax.random.normal(kx, (batch, in_ch, spatial, spatial), jnp.float32)
        params = init_params(kp, in_ch, out_ch, stride)

        fwd = jax.jit(functools.partial(basic_block_forward, stride=stride))
        out = jax.block_until_ready(fwd(x, params))
        ref = jax.block_until_ready(basic_block_reference(x, params, stride))

        assert out.shape == ref.shape == (
            batch, out_ch, spatial // stride, spatial // stride
        )
        # bf16 MXU inputs + bf16 intermediates (f32 accumulation everywhere)
        # vs f32 HIGHEST reference
        assert jnp.allclose(out, ref, rtol=3e-2, atol=3e-2), "mismatch vs reference"

    print("KERNEL_OK")
</pallas_src>

<mosaic_0001>
module attributes {stable_mosaic.version = 11 : i64} {
  func.func @_conv_stats_kernel(%arg0: i32, %arg1: memref<256x128xbf16, #tpu.memory_space<vmem>>, %arg2: memref<128x128xbf16, #tpu.memory_space<vmem>>, %arg3: memref<256x128xbf16, #tpu.memory_space<vmem>>, %arg4: memref<1x1x128xf32, #tpu.memory_space<vmem>>, %arg5: memref<1x1x128xf32, #tpu.memory_space<vmem>>) attributes {dimension_semantics = [#tpu.dimension_semantics<parallel>], iteration_bounds = array<i64: 2>, scalar_prefetch = 0 : i64, scratch_operands = 0 : i64, tpu.core_type = #tpu.core_type<tc>, window_params = [{transform_indices = @transform_0, window_bounds = array<i64: 256, 128>}, {pipeline_mode = #tpu.pipeline_mode<synchronous>, transform_indices = @transform_1, window_bounds = array<i64: 128, 128>}, {transform_indices = @transform_2, window_bounds = array<i64: 256, 128>}, {transform_indices = @transform_3, window_bounds = array<i64: 1, 1, 128>}, {transform_indices = @transform_4, window_bounds = array<i64: 1, 1, 128>}]} {
    %c0 = arith.constant 0 : index
    %c0_0 = arith.constant 0 : index
    %0 = vector.load %arg1[%c0, %c0_0] : memref<256x128xbf16, #tpu.memory_space<vmem>>, vector<256x128xbf16>
    %c0_1 = arith.constant 0 : index
    %c0_2 = arith.constant 0 : index
    %1 = vector.load %arg2[%c0_1, %c0_2] : memref<128x128xbf16, #tpu.memory_space<vmem>>, vector<128x128xbf16>
    %cst = arith.constant dense<0.000000e+00> : vector<256x128xf32>
    %2 = tpu.matmul %0, %1, %cst {dimension_numbers = #tpu.dot_dimension_numbers<[1], [0], [0], [1], [0, 0, 1, 1], [], []>} : vector<256x128xbf16>, vector<128x128xbf16>, vector<256x128xf32> -> vector<256x128xf32>
    %3 = arith.truncf %2 : vector<256x128xf32> to vector<256x128xbf16>
    %c0_3 = arith.constant 0 : index
    %c0_4 = arith.constant 0 : index
    %4 = vector.load %arg3[%c0_3, %c0_4] : memref<256x128xbf16, #tpu.memory_space<vmem>>, vector<256x128xbf16>
    tpu.vector_store %arg3[%c0_3, %c0_4], %3 {strides = array<i32>} : memref<256x128xbf16, #tpu.memory_space<vmem>>, vector<256x128xbf16>,
    %cst_5 = arith.constant dense<0.000000e+00> : vector<128xf32>
    %5 = vector.multi_reduction <add>, %2, %cst_5 [0] : vector<256x128xf32> to vector<128xf32>
    %6 = vector.shape_cast %5 : vector<128xf32> to vector<1x128xf32>
    %7 = vector.shape_cast %6 : vector<1x128xf32> to vector<1x1x128xf32>
    %c0_6 = arith.constant 0 : index
    %c0_7 = arith.constant 0 : index
    %c0_8 = arith.constant 0 : index
    %8 = vector.load %arg4[%c0_6, %c0_7, %c0_8] : memref<1x1x128xf32, #tpu.memory_space<vmem>>, vector<1x1x128xf32>
    tpu.vector_store %arg4[%c0_6, %c0_7, %c0_8], %7 {strides = array<i32>} : memref<1x1x128xf32, #tpu.memory_space<vmem>>, vector<1x1x128xf32>,
    %9 = arith.mulf %2, %2 : vector<256x128xf32>
    %cst_9 = arith.constant dense<0.000000e+00> : vector<128xf32>
    %10 = vector.multi_reduction <add>, %9, %cst_9 [0] : vector<256x128xf32> to vector<128xf32>
    %11 = vector.shape_cast %10 : vector<128xf32> to vector<1x128xf32>
    %12 = vector.shape_cast %11 : vector<1x128xf32> to vector<1x1x128xf32>
    %c0_10 = arith.constant 0 : index
    %c0_11 = arith.constant 0 : index
    %c0_12 = arith.constant 0 : index
    %13 = vector.load %arg5[%c0_10, %c0_11, %c0_12] : memref<1x1x128xf32, #tpu.memory_space<vmem>>, vector<1x1x128xf32>
    tpu.vector_store %arg5[%c0_10, %c0_11, %c0_12], %12 {strides = array<i32>} : memref<1x1x128xf32, #tpu.memory_space<vmem>>, vector<1x1x128xf32>,
    return
  }
  func.func @transform_0(%arg0: i32) -> (i32, i32) {
    %c0_i32 = arith.constant 0 : i32
    %c0_i32_0 = arith.constant 0 : i32
    return %arg0, %c0_i32 : i32, i32
  }
  func.func @transform_1(%arg0: i32) -> (i32, i32) {
    %c0_i32 = arith.constant 0 : i32
    %c0_i32_0 = arith.constant 0 : i32
    %c0_i32_1 = arith.constant 0 : i32
    return %c0_i32, %c0_i32_0 : i32, i32
  }
  func.func @transform_2(%arg0: i32) -> (i32, i32) {
    %c0_i32 = arith.constant 0 : i32
    %c0_i32_0 = arith.constant 0 : i32
    return %arg0, %c0_i32 : i32, i32
  }
  func.func @transform_3(%arg0: i32) -> (i32, i32, i32) {
    %c0_i32 = arith.constant 0 : i32
    %c0_i32_0 = arith.constant 0 : i32
    %c0_i32_1 = arith.constant 0 : i32
    return %arg0, %c0_i32, %c0_i32_0 : i32, i32, i32
  }
  func.func @transform_4(%arg0: i32) -> (i32, i32, i32) {
    %c0_i32 = arith.constant 0 : i32
    %c0_i32_0 = arith.constant 0 : i32
    %c0_i32_1 = arith.constant 0 : i32
    return %arg0, %c0_i32, %c0_i32_0 : i32, i32, i32
  }
}

module attributes {stable_mosaic.version = 11 : i64} {
  func.func @kernel(%arg0: i32, %arg1: memref<256x128xbf16, #tpu.memory_space<vmem>>, %arg2: memref<1x128xf32, #tpu.memory_space<vmem>>, %arg3: memref<1x128xf32, #tpu.memory_space<vmem>>, %arg4: memref<256x128xbf16, #tpu.memory_space<vmem>>) attributes {dimension_semantics = [#tpu.dimension_semantics<parallel>], iteration_bounds = array<i64: 2>, scalar_prefetch = 0 : i64, scratch_operands = 0 : i64, tpu.core_type = #tpu.core_type<tc>, window_params = [{transform_indices = @transform_0, window_bounds = array<i64: 256, 128>}, {pipeline_mode = #tpu.pipeline_mode<synchronous>, transform_indices = @transform_1, window_bounds = array<i64: 1, 128>}, {pipeline_mode = #tpu.pipeline_mode<synchronous>, transform_indices = @transform_2, window_bounds = array<i64: 1, 128>}, {transform_indices = @transform_3, window_bounds = array<i64: 256, 128>}]} {
    %c0 = arith.constant 0 : index
    %c0_0 = arith.constant 0 : index
    %0 = vector.load %arg1[%c0, %c0_0] : memref<256x128xbf16, #tpu.memory_space<vmem>>, vector<256x128xbf16>
    %1 = arith.extf %0 : vector<256x128xbf16> to vector<256x128xf32>
    %c0_1 = arith.constant 0 : index
    %c0_2 = arith.constant 0 : index
    %2 = vector.load %arg2[%c0_1, %c0_2] : memref<1x128xf32, #tpu.memory_space<vmem>>, vector<1x128xf32>
    %3 = vector.broadcast %2 : vector<1x128xf32> to vector<256x128xf32>
    %4 = arith.mulf %1, %3 : vector<256x128xf32>
    %c0_3 = arith.constant 0 : index
    %c0_4 = arith.constant 0 : index
    %5 = vector.load %arg3[%c0_3, %c0_4] : memref<1x128xf32, #tpu.memory_space<vmem>>, vector<1x128xf32>
    %6 = vector.broadcast %5 : vector<1x128xf32> to vector<256x128xf32>
    %7 = arith.addf %4, %6 : vector<256x128xf32>
    %cst = arith.constant 0.000000e+00 : f32
    %8 = vector.broadcast %cst : f32 to vector<256x128xf32>
    %9 = arith.maximumf %7, %8 : vector<256x128xf32>
    %10 = arith.truncf %9 : vector<256x128xf32> to vector<256x128xbf16>
    %c0_5 = arith.constant 0 : index
    %c0_6 = arith.constant 0 : index
    %11 = vector.load %arg4[%c0_5, %c0_6] : memref<256x128xbf16, #tpu.memory_space<vmem>>, vector<256x128xbf16>
    tpu.vector_store %arg4[%c0_5, %c0_6], %10 {strides = array<i32>} : memref<256x128xbf16, #tpu.memory_space<vmem>>, vector<256x128xbf16>,
    return
  }
  func.func @transform_0(%arg0: i32) -> (i32, i32) {
    %c0_i32 = arith.constant 0 : i32
    %c0_i32_0 = arith.constant 0 : i32
    return %arg0, %c0_i32 : i32, i32
  }
  func.func @transform_1(%arg0: i32) -> (i32, i32) {
    %c0_i32 = arith.constant 0 : i32
    %c0_i32_0 = arith.constant 0 : i32
    %c0_i32_1 = arith.constant 0 : i32
    return %c0_i32, %c0_i32_0 : i32, i32
  }
  func.func @transform_2(%arg0: i32) -> (i32, i32) {
    %c0_i32 = arith.constant 0 : i32
    %c0_i32_0 = arith.constant 0 : i32
    %c0_i32_1 = arith.constant 0 : i32
    return %c0_i32, %c0_i32_0 : i32, i32
  }
  func.func @transform_3(%arg0: i32) -> (i32, i32) {
    %c0_i32 = arith.constant 0 : i32
    %c0_i32_0 = arith.constant 0 : i32
    return %arg0, %c0_i32 : i32, i32
  }
}

module attributes {stable_mosaic.version = 11 : i64} {
  func.func @kernel(%arg0: i32, %arg1: memref<256x128xbf16, #tpu.memory_space<vmem>>, %arg2: memref<1x128xf32, #tpu.memory_space<vmem>>, %arg3: memref<1x128xf32, #tpu.memory_space<vmem>>, %arg4: memref<256x128xbf16, #tpu.memory_space<vmem>>) attributes {dimension_semantics = [#tpu.dimension_semantics<parallel>], iteration_bounds = array<i64: 2>, scalar_prefetch = 0 : i64, scratch_operands = 0 : i64, tpu.core_type = #tpu.core_type<tc>, window_params = [{transform_indices = @transform_0, window_bounds = array<i64: 256, 128>}, {pipeline_mode = #tpu.pipeline_mode<synchronous>, transform_indices = @transform_1, window_bounds = array<i64: 1, 128>}, {pipeline_mode = #tpu.pipeline_mode<synchronous>, transform_indices = @transform_2, window_bounds = array<i64: 1, 128>}, {transform_indices = @transform_3, window_bounds = array<i64: 256, 128>}]} {
    %c0 = arith.constant 0 : index
    %c0_0 = arith.constant 0 : index
    %0 = vector.load %arg1[%c0, %c0_0] : memref<256x128xbf16, #tpu.memory_space<vmem>>, vector<256x128xbf16>
    %1 = arith.extf %0 : vector<256x128xbf16> to vector<256x128xf32>
    %c0_1 = arith.constant 0 : index
    %c0_2 = arith.constant 0 : index
    %2 = vector.load %arg2[%c0_1, %c0_2] : memref<1x128xf32, #tpu.memory_space<vmem>>, vector<1x128xf32>
    %3 = vector.broadcast %2 : vector<1x128xf32> to vector<256x128xf32>
    %4 = arith.mulf %1, %3 : vector<256x128xf32>
    %c0_3 = arith.constant 0 : index
    %c0_4 = arith.constant 0 : index
    %5 = vector.load %arg3[%c0_3, %c0_4] : memref<1x128xf32, #tpu.memory_space<vmem>>, vector<1x128xf32>
    %6 = vector.broadcast %5 : vector<1x128xf32> to vector<256x128xf32>
    %7 = arith.addf %4, %6 : vector<256x128xf32>
    %8 = arith.truncf %7 : vector<256x128xf32> to vector<256x128xbf16>
    %c0_5 = arith.constant 0 : index
    %c0_6 = arith.constant 0 : index
    %9 = vector.load %arg4[%c0_5, %c0_6] : memref<256x128xbf16, #tpu.memory_space<vmem>>, vector<256x128xbf16>
    tpu.vector_store %arg4[%c0_5, %c0_6], %8 {strides = array<i32>} : memref<256x128xbf16, #tpu.memory_space<vmem>>, vector<256x128xbf16>,
    return
  }
  func.func @transform_0(%arg0: i32) -> (i32, i32) {
    %c0_i32 = arith.constant 0 : i32
    %c0_i32_0 = arith.constant 0 : i32
    return %arg0, %c0_i32 : i32, i32
  }
  func.func @transform_1(%arg0: i32) -> (i32, i32) {
    %c0_i32 = arith.constant 0 : i32
    %c0_i32_0 = arith.constant 0 : i32
    %c0_i32_1 = arith.constant 0 : i32
    return %c0_i32, %c0_i32_0 : i32, i32
  }
  func.func @transform_2(%arg0: i32) -> (i32, i32) {
    %c0_i32 = arith.constant 0 : i32
    %c0_i32_0 = arith.constant 0 : i32
    %c0_i32_1 = arith.constant 0 : i32
    return %c0_i32, %c0_i32_0 : i32, i32
  }
  func.func @transform_3(%arg0: i32) -> (i32, i32) {
    %c0_i32 = arith.constant 0 : i32
    %c0_i32_0 = arith.constant 0 : i32
    return %arg0, %c0_i32 : i32, i32
  }
}

module attributes {stable_mosaic.version = 11 : i64} {
  func.func @kernel(%arg0: i32, %arg1: memref<256x128xbf16, #tpu.memory_space<vmem>>, %arg2: memref<1x128xf32, #tpu.memory_space<vmem>>, %arg3: memref<1x128xf32, #tpu.memory_space<vmem>>, %arg4: memref<256x128xbf16, #tpu.memory_space<vmem>>, %arg5: memref<256x128xbf16, #tpu.memory_space<vmem>>) attributes {dimension_semantics = [#tpu.dimension_semantics<parallel>], iteration_bounds = array<i64: 2>, scalar_prefetch = 0 : i64, scratch_operands = 0 : i64, tpu.core_type = #tpu.core_type<tc>, window_params = [{transform_indices = @transform_0, window_bounds = array<i64: 256, 128>}, {pipeline_mode = #tpu.pipeline_mode<synchronous>, transform_indices = @transform_1, window_bounds = array<i64: 1, 128>}, {pipeline_mode = #tpu.pipeline_mode<synchronous>, transform_indices = @transform_2, window_bounds = array<i64: 1, 128>}, {transform_indices = @transform_3, window_bounds = array<i64: 256, 128>}, {transform_indices = @transform_4, window_bounds = array<i64: 256, 128>}]} {
    %c0 = arith.constant 0 : index
    %c0_0 = arith.constant 0 : index
    %0 = vector.load %arg1[%c0, %c0_0] : memref<256x128xbf16, #tpu.memory_space<vmem>>, vector<256x128xbf16>
    %1 = arith.extf %0 : vector<256x128xbf16> to vector<256x128xf32>
    %c0_1 = arith.constant 0 : index
    %c0_2 = arith.constant 0 : index
    %2 = vector.load %arg2[%c0_1, %c0_2] : memref<1x128xf32, #tpu.memory_space<vmem>>, vector<1x128xf32>
    %3 = vector.broadcast %2 : vector<1x128xf32> to vector<256x128xf32>
    %4 = arith.mulf %1, %3 : vector<256x128xf32>
    %c0_3 = arith.constant 0 : index
    %c0_4 = arith.constant 0 : index
    %5 = vector.load %arg3[%c0_3, %c0_4] : memref<1x128xf32, #tpu.memory_space<vmem>>, vector<1x128xf32>
    %6 = vector.broadcast %5 : vector<1x128xf32> to vector<256x128xf32>
    %7 = arith.addf %4, %6 : vector<256x128xf32>
    %c0_5 = arith.constant 0 : index
    %c0_6 = arith.constant 0 : index
    %8 = vector.load %arg4[%c0_5, %c0_6] : memref<256x128xbf16, #tpu.memory_space<vmem>>, vector<256x128xbf16>
    %9 = arith.extf %8 : vector<256x128xbf16> to vector<256x128xf32>
    %10 = arith.addf %7, %9 : vector<256x128xf32>
    %cst = arith.constant 0.000000e+00 : f32
    %11 = vector.broadcast %cst : f32 to vector<256x128xf32>
    %12 = arith.maximumf %10, %11 : vector<256x128xf32>
    %13 = arith.truncf %12 : vector<256x128xf32> to vector<256x128xbf16>
    %c0_7 = arith.constant 0 : index
    %c0_8 = arith.constant 0 : index
    %14 = vector.load %arg5[%c0_7, %c0_8] : memref<256x128xbf16, #tpu.memory_space<vmem>>, vector<256x128xbf16>
    tpu.vector_store %arg5[%c0_7, %c0_8], %13 {strides = array<i32>} : memref<256x128xbf16, #tpu.memory_space<vmem>>, vector<256x128xbf16>,
    return
  }
  func.func @transform_0(%arg0: i32) -> (i32, i32) {
    %c0_i32 = arith.constant 0 : i32
    %c0_i32_0 = arith.constant 0 : i32
    return %arg0, %c0_i32 : i32, i32
  }
  func.func @transform_1(%arg0: i32) -> (i32, i32) {
    %c0_i32 = arith.constant 0 : i32
    %c0_i32_0 = arith.constant 0 : i32
    %c0_i32_1 = arith.constant 0 : i32
    return %c0_i32, %c0_i32_0 : i32, i32
  }
  func.func @transform_2(%arg0: i32) -> (i32, i32) {
    %c0_i32 = arith.constant 0 : i32
    %c0_i32_0 = arith.constant 0 : i32
    %c0_i32_1 = arith.constant 0 : i32
    return %c0_i32, %c0_i32_0 : i32, i32
  }
  func.func @transform_3(%arg0: i32) -> (i32, i32) {
    %c0_i32 = arith.constant 0 : i32
    %c0_i32_0 = arith.constant 0 : i32
    return %arg0, %c0_i32 : i32, i32
  }
  func.func @transform_4(%arg0: i32) -> (i32, i32) {
    %c0_i32 = arith.constant 0 : i32
    %c0_i32_0 = arith.constant 0 : i32
    return %arg0, %c0_i32 : i32, i32
  }
}

</mosaic_0001>

<bundles_post_ra>
// kernel: basic_block_forward.7
= control target key start
LH: loop header
LB: loop body
LE: loop exit
PB: predicated region body
PF: predicated region fallthrough
CT: control target
= control target key end

     0   :  { %s851_s12 = smov 0   ;;  %s985_s0 = inlined_call_operand.vmem [shape: bf16[512,128], index: 0, kind: input, shape index: {}]   ;;  %s986_s1 = inlined_call_operand.vmem [shape: f32[1,128], index: 1, kind: input, shape index: {}]   ;;  %s987_s2 = inlined_call_operand.vmem [shape: f32[1,128], index: 2, kind: input, shape index: {}]   ;;  %s988_s3 = inlined_call_operand.vmem [shape: bf16[512,128], index: 3, kind: output, shape index: {}]  }
   0x1 LB: > { %s564_s13 = sadd.s32 4294967295, %s829_s12   ;;  %p568_p0 = scmp.ge.s32.totalorder %s829_s12, 1  ;;  %s829_s12 = sphi %s851_s12, %s13_s12  }
   0x2   : > { %p138_p1 = scmp.lt.s32.totalorder %s829_s12, 3 }
   0x4   : > { %p139_p2 = pnand %p568_p0, %p138_p1 }
   0x5   : > { %s569_s14 = sshll.u32 (!%p139_p2), %s564_s13, 5  ;;  %v872_v0 = vld [vmem:[%s986_s1] ss:$0 sm:$0xff] (!%p139_p2) }
   0x6   : > { %142 = sbr.rel (%p139_p2) target bundleno = 59 (0x3b), region = 32  ;;  %p163_p3 = scmp.lt.s32.totalorder (!%p139_p2), %s569_s14, 63  ;;  %v881_v9 = vld [vmem:[%s987_s2] ss:$0 sm:$0xff] (!%p139_p2) }
   0xd   : > { %s990_s14 = smov (!%p163_p3, %s569_s14), 63 }
   0xe   : > { %s570_s15 = sshll.u32 %s990_s14, 2 }
   0xf   : > { %s867_s18 = scalar_lea.vmem %s985_s0, %s570_s15  ;;  %s906_s25 = scalar_lea.vmem %s988_s3, %s570_s15 }
  0x10   : > { %v642_v1 = vld [vmem:[%s867_s18] sm:$0xff]   ;;  %v785_v2 = vld [vmem:[%s867_s18 + $0x8] sm:$0xff]   ;;  %v786_v3 = vld [vmem:[%s867_s18 + $0x10] sm:$0xff]  }
  0x11   : > { %v643_v4 = vunpack.c.l.bf16 %v642_v1  ;;  %v644_v5 = vunpack.c.h.bf16 %v642_v1  ;;  %v647_v6 = vunpack.c.l.bf16 %v785_v2  ;;  %v648_v7 = vunpack.c.h.bf16 %v785_v2  ;;  %v787_v8 = vld [vmem:[%s867_s18 + $0x18] sm:$0xff]   ;;  %v788_v30 = vld [vmem:[%s867_s18 + $0x20] sm:$0xff]   ;;  %v789_v35 = vld [vmem:[%s867_s18 + $0x28] sm:$0xff]  }
  0x12   : > { %v651_v10 = vunpack.c.l.bf16 %v786_v3  ;;  %v652_v11 = vunpack.c.h.bf16 %v786_v3  ;;  %v655_v12 = vunpack.c.l.bf16 %v787_v8  ;;  %v656_v13 = vunpack.c.h.bf16 %v787_v8  ;;  %v790_v40 = vld [vmem:[%s867_s18 + $0x30] sm:$0xff]   ;;  %v791_v45 = vld [vmem:[%s867_s18 + $0x38] sm:$0xff]   ;;  %v792_v3 = vld [vmem:[%s867_s18 + $0x40] sm:$0xff]  }
  0x13   : > { %v245_v14 = vmul.f32 %v643_v4, %v872_v0  ;;  %v246_v15 = vmul.f32 %v644_v5, %v872_v0  ;;  %v247_v16 = vmul.f32 %v647_v6, %v872_v0  ;;  %v248_v17 = vmul.f32 %v648_v7, %v872_v0 }
  0x14   : > { %v249_v18 = vmul.f32 %v651_v10, %v872_v0  ;;  %v250_v19 = vmul.f32 %v652_v11, %v872_v0  ;;  %v251_v20 = vmul.f32 %v655_v12, %v872_v0  ;;  %v252_v21 = vmul.f32 %v656_v13, %v872_v0  ;;  %v793_v13 = vld [vmem:[%s867_s18 + $0x48] sm:$0xff]  }
  0x15   : > { %v284_v22 = vadd.f32 %v881_v9, %v245_v14  ;;  %v285_v23 = vadd.f32 %v881_v9, %v246_v15  ;;  %v286_v24 = vadd.f32 %v881_v9, %v247_v16  ;;  %v287_v25 = vadd.f32 %v881_v9, %v248_v17 }
  0x16   : > { %v288_v26 = vadd.f32 %v881_v9, %v249_v18  ;;  %v289_v27 = vadd.f32 %v881_v9, %v250_v19  ;;  %v290_v28 = vadd.f32 %v881_v9, %v251_v20  ;;  %v291_v29 = vadd.f32 %v881_v9, %v252_v21  ;;  %v794_v18 = vld [vmem:[%s867_s18 + $0x50] sm:$0xff]  }
  0x17   : > { %v316_v31 = vmax.f32 %v284_v22, 0.0  ;;  %v317_v32 = vmax.f32 %v285_v23, 0.0  ;;  %v318_v33 = vmax.f32 %v286_v24, 0.0  ;;  %v319_v34 = vmax.f32 %v287_v25, 0.0  ;;  %v795_v23 = vld [vmem:[%s867_s18 + $0x58] sm:$0xff]  }
  0x18   : > { %v320_v36 = vmax.f32 %v288_v26, 0.0  ;;  %v321_v37 = vmax.f32 %v289_v27, 0.0  ;;  %v322_v38 = vmax.f32 %v290_v28, 0.0  ;;  %v323_v39 = vmax.f32 %v291_v29, 0.0 }
  0x19   : > { %v708_v41 = vpack.c.bf16 %v317_v32, %v316_v31  ;;  %v713_v42 = vpack.c.bf16 %v319_v34, %v318_v33  ;;  %v659_v43 = vunpack.c.l.bf16 %v788_v30  ;;  %v660_v44 = vunpack.c.h.bf16 %v788_v30 }
  0x1a   : > { %v718_v46 = vpack.c.bf16 %v321_v37, %v320_v36  ;;  %v723_v47 = vpack.c.bf16 %v323_v39, %v322_v38  ;;  %v663_v48 = vunpack.c.l.bf16 %v789_v35  ;;  %v664_v49 = vunpack.c.h.bf16 %v789_v35 }
  0x1b   : > { %709 = vst [vmem:[%s906_s25] sm:$0xff] %v708_v41   ;;  %800 = vst [vmem:[%s906_s25 + $0x8] sm:$0xff] %v713_v42   ;;  %v253_v50 = vmul.f32 %v659_v43, %v872_v0  ;;  %v254_v51 = vmul.f32 %v660_v44, %v872_v0  ;;  %v667_v52 = vunpack.c.l.bf16 %v790_v40  ;;  %v668_v53 = vunpack.c.h.bf16 %v790_v40  ;;  %v796_v40 = vld [vmem:[%s867_s18 + $0x60] sm:$0xff]  }
  0x1c   : > { %801 = vst [vmem:[%s906_s25 + $0x10] sm:$0xff] %v718_v46   ;;  %802 = vst [vmem:[%s906_s25 + $0x18] sm:$0xff] %v723_v47   ;;  %v255_v54 = vmul.f32 %v663_v48, %v872_v0  ;;  %v256_v55 = vmul.f32 %v664_v49, %v872_v0  ;;  %v671_v56 = vunpack.c.l.bf16 %v791_v45  ;;  %v672_v57 = vunpack.c.h.bf16 %v791_v45 }
  0x1d   : > { %v292_v58 = vadd.f32 %v881_v9, %v253_v50  ;;  %v293_v59 = vadd.f32 %v881_v9, %v254_v51  ;;  %v257_v60 = vmul.f32 %v667_v52, %v872_v0  ;;  %v258_v61 = vmul.f32 %v668_v53, %v872_v0  ;;  %v797_v53 = vld [vmem:[%s867_s18 + $0x68] sm:$0xff]  }
  0x1e   : > { %v294_v62 = vadd.f32 %v881_v9, %v255_v54  ;;  %v295_v63 = vadd.f32 %v881_v9, %v256_v55  ;;  %v259_v1 = vmul.f32 %v671_v56, %v872_v0  ;;  %v260_v2 = vmul.f32 %v672_v57, %v872_v0 }
  0x1f   : > { %v324_v4 = vmax.f32 %v292_v58, 0.0  ;;  %v325_v5 = vmax.f32 %v293_v59, 0.0  ;;  %v296_v6 = vadd.f32 %v881_v9, %v257_v60  ;;  %v297_v7 = vadd.f32 %v881_v9, %v258_v61  ;;  %v798_v58 = vld [vmem:[%s867_s18 + $0x70] sm:$0xff]  }
  0x20   : > { %v326_v8 = vmax.f32 %v294_v62, 0.0  ;;  %v327_v10 = vmax.f32 %v295_v63, 0.0  ;;  %v298_v11 = vadd.f32 %v881_v9, %v259_v1  ;;  %v299_v12 = vadd.f32 %v881_v9, %v260_v2  ;;  %v799_v63 = vld [vmem:[%s867_s18 + $0x78] sm:$0xff]  }
  0x21   : > { %v728_v14 = vpack.c.bf16 %v325_v5, %v324_v4  ;;  %v328_v15 = vmax.f32 %v296_v6, 0.0  ;;  %v329_v16 = vmax.f32 %v297_v7, 0.0  ;;  %v675_v17 = vunpack.c.l.bf16 %v792_v3 }
  0x22   : > { %v733_v19 = vpack.c.bf16 %v327_v10, %v326_v8  ;;  %v330_v20 = vmax.f32 %v298_v11, 0.0  ;;  %v331_v21 = vmax.f32 %v299_v12, 0.0  ;;  %v676_v22 = vunpack.c.h.bf16 %v792_v3 }
  0x23   : > { %803 = vst [vmem:[%s906_s25 + $0x20] sm:$0xff] %v728_v14   ;;  %v738_v24 = vpack.c.bf16 %v329_v16, %v328_v15  ;;  %v261_v25 = vmul.f32 %v675_v17, %v872_v0  ;;  %v679_v26 = vunpack.c.l.bf16 %v793_v13  ;;  %v680_v27 = vunpack.c.h.bf16 %v793_v13 }
  0x24   : > { %804 = vst [vmem:[%s906_s25 + $0x28] sm:$0xff] %v733_v19   ;;  %v743_v28 = vpack.c.bf16 %v331_v21, %v330_v20  ;;  %v262_v29 = vmul.f32 %v676_v22, %v872_v0  ;;  %v683_v30 = vunpack.c.l.bf16 %v794_v18  ;;  %v684_v31 = vunpack.c.h.bf16 %v794_v18 }
  0x25   : > { %805 = vst [vmem:[%s906_s25 + $0x30] sm:$0xff] %v738_v24   ;;  %v300_v32 = vadd.f32 %v881_v9, %v261_v25  ;;  %v263_v33 = vmul.f32 %v679_v26, %v872_v0  ;;  %v264_v34 = vmul.f32 %v680_v27, %v872_v0  ;;  %v687_v35 = vunpack.c.l.bf16 %v795_v23 }
  0x26   : > { %806 = vst [vmem:[%s906_s25 + $0x38] sm:$0xff] %v743_v28   ;;  %v301_v36 = vadd.f32 %v881_v9, %v262_v29  ;;  %v265_v37 = vmul.f32 %v683_v30, %v872_v0  ;;  %v266_v38 = vmul.f32 %v684_v31, %v872_v0  ;;  %v688_v39 = vunpack.c.h.bf16 %v795_v23 }
  0x27   : > { %v332_v41 = vmax.f32 %v300_v32, 0.0  ;;  %v302_v42 = vadd.f32 %v881_v9, %v263_v33  ;;  %v303_v43 = vadd.f32 %v881_v9, %v264_v34  ;;  %v267_v44 = vmul.f32 %v687_v35, %v872_v0 }
  0x28   : > { %v333_v45 = vmax.f32 %v301_v36, 0.0  ;;  %v304_v46 = vadd.f32 %v881_v9, %v265_v37  ;;  %v305_v47 = vadd.f32 %v881_v9, %v266_v38  ;;  %v268_v48 = vmul.f32 %v688_v39, %v872_v0 }
  0x29   : > { %v334_v49 = vmax.f32 %v302_v42, 0.0  ;;  %v335_v50 = vmax.f32 %v303_v43, 0.0  ;;  %v306_v51 = vadd.f32 %v881_v9, %v267_v44  ;;  %v691_v52 = vunpack.c.l.bf16 %v796_v40 }
  0x2a   : > { %v748_v54 = vpack.c.bf16 %v333_v45, %v332_v41  ;;  %v336_v55 = vmax.f32 %v304_v46, 0.0  ;;  %v337_v56 = vmax.f32 %v305_v47, 0.0  ;;  %v307_v57 = vadd.f32 %v881_v9, %v268_v48 }
  0x2b   : > { %v753_v59 = vpack.c.bf16 %v335_v50, %v334_v49  ;;  %v338_v60 = vmax.f32 %v306_v51, 0.0  ;;  %v692_v61 = vunpack.c.h.bf16 %v796_v40  ;;  %v269_v62 = vmul.f32 %v691_v52, %v872_v0 }
  0x2c   : > { %807 = vst [vmem:[%s906_s25 + $0x40] sm:$0xff] %v748_v54   ;;  %v758_v1 = vpack.c.bf16 %v337_v56, %v336_v55  ;;  %v339_v2 = vmax.f32 %v307_v57, 0.0  ;;  %v695_v3 = vunpack.c.l.bf16 %v797_v53  ;;  %v696_v4 = vunpack.c.h.bf16 %v797_v53 }
  0x2d   : > { %808 = vst [vmem:[%s906_s25 + $0x48] sm:$0xff] %v753_v59   ;;  %v270_v5 = vmul.f32 %v692_v61, %v872_v0  ;;  %v308_v6 = vadd.f32 %v881_v9, %v269_v62  ;;  %v699_v7 = vunpack.c.l.bf16 %v798_v58  ;;  %v700_v8 = vunpack.c.h.bf16 %v798_v58 }
  0x2e   : > { %809 = vst [vmem:[%s906_s25 + $0x50] sm:$0xff] %v758_v1   ;;  %v763_v10 = vpack.c.bf16 %v339_v2, %v338_v60  ;;  %v271_v11 = vmul.f32 %v695_v3, %v872_v0  ;;  %v272_v12 = vmul.f32 %v696_v4, %v872_v0  ;;  %v703_v13 = vunpack.c.l.bf16 %v799_v63 }
  0x2f   : > { %v309_v14 = vadd.f32 %v881_v9, %v270_v5  ;;  %v340_v15 = vmax.f32 %v308_v6, 0.0  ;;  %v273_v16 = vmul.f32 %v699_v7, %v872_v0  ;;  %v274_v17 = vmul.f32 %v700_v8, %v872_v0 }
  0x30   : > { %810 = vst [vmem:[%s906_s25 + $0x58] sm:$0xff] %v763_v10   ;;  %v310_v18 = vadd.f32 %v881_v9, %v271_v11  ;;  %v311_v19 = vadd.f32 %v881_v9, %v272_v12  ;;  %v704_v20 = vunpack.c.h.bf16 %v799_v63  ;;  %v275_v21 = vmul.f32 %v703_v13, %v872_v0 }
  0x31   : > { %v341_v22 = vmax.f32 %v309_v14, 0.0  ;;  %v312_v23 = vadd.f32 %v881_v9, %v273_v16  ;;  %v313_v24 = vadd.f32 %v881_v9, %v274_v17 }
  0x32   : > { %v342_v25 = vmax.f32 %v310_v18, 0.0  ;;  %v343_v26 = vmax.f32 %v311_v19, 0.0  ;;  %v276_v27 = vmul.f32 %v704_v20, %v872_v0  ;;  %v314_v28 = vadd.f32 %v881_v9, %v275_v21 }
  0x33   : > { %v768_v29 = vpack.c.bf16 %v341_v22, %v340_v15  ;;  %v344_v30 = vmax.f32 %v312_v23, 0.0  ;;  %v345_v31 = vmax.f32 %v313_v24, 0.0 }
  0x34   : > { %v773_v32 = vpack.c.bf16 %v343_v26, %v342_v25  ;;  %v315_v33 = vadd.f32 %v881_v9, %v276_v27  ;;  %v346_v34 = vmax.f32 %v314_v28, 0.0 }
  0x35   : > { %811 = vst [vmem:[%s906_s25 + $0x60] sm:$0xff] %v768_v29   ;;  %v778_v35 = vpack.c.bf16 %v345_v31, %v344_v30 }
  0x36   : > { %812 = vst [vmem:[%s906_s25 + $0x68] sm:$0xff] %v773_v32   ;;  %v347_v36 = vmax.f32 %v315_v33, 0.0 }
  0x37   : > { %813 = vst [vmem:[%s906_s25 + $0x70] sm:$0xff] %v778_v35  }
  0x38   : > { %v783_v37 = vpack.c.bf16 %v347_v36, %v346_v34 }
  0x3a   : > { %814 = vst [vmem:[%s906_s25 + $0x78] sm:$0xff] %v783_v37  }
  0x3b PF: > { %s13_s12 = sadd.s32 1, %s829_s12  }
  0x3c   : > { %p10_p4 = scmp.ge.s32.totalorder %s13_s12, 4  }
  0x3e   :  { %12 = sbr.rel (!%p10_p4) target bundleno = 1 (0x1), region = 62 }

// kernel: basic_block_forward.6
= control target key start
LH: loop header
LB: loop body
LE: loop exit
PB: predicated region body
PF: predicated region fallthrough
CT: control target
= control target key end

     0   :  { %s1293_s15 = smov 0   ;;  %s1472_s0 = inlined_call_operand.vmem [shape: bf16[512,128], index: 0, kind: input, shape index: {}]   ;;  %s1473_s1 = inlined_call_operand.vmem [shape: bf16[128,128], index: 1, kind: input, shape index: {}]   ;;  %s1474_s2 = inlined_call_operand.vmem [shape: bf16[512,128], index: 2, kind: output, shape index: {0}]   ;;  %s1475_s3 = inlined_call_operand.vmem [shape: f32[2,1,128], index: 3, kind: output, shape index: {1}]   ;;  %s1476_s4 = inlined_call_operand.vmem [shape: f32[2,1,128], index: 4, kind: output, shape index: {2}]  }
   0x1 LB: > { %s1299_s16 = sadd.s32 4294967295, %s1266_s15   ;;  %p950_p0 = scmp.ge.s32.totalorder %s1266_s15, 1  ;;  %s1266_s15 = sphi %s1293_s15, %s15_s15  }
   0x2   : > { %p168_p1 = scmp.lt.s32.totalorder %s1266_s15, 3 }
   0x4   : > { %p169_p2 = pnand %p950_p0, %p168_p1 }
   0x5   : > { %v1236_v0 = vld [vmem:[%s1473_s1] sm:$0xff] (!%p169_p2)   ;;  %s951_s19 = sshll.u32 (!%p169_p2), %s1299_s16, 5  ;;  %v1237_v1 = vld [vmem:[%s1473_s1 + $0x8] sm:$0xff] (!%p169_p2)   ;;  %v1238_v2 = vld [vmem:[%s1473_s1 + $0x10] sm:$0xff] (!%p169_p2)   ;;  %p212_p4 = scmp.lt.s32.totalorder (!%p169_p2), %s1299_s16, 1 }
   0x6   : > { %172 = sbr.rel (%p169_p2) target bundleno = 330 (0x14a), region = 28  ;;  %p201_p3 = scmp.lt.s32.totalorder (!%p169_p2), %s951_s19, 63  ;;  %1164 = vmatprep.subr.bf16.mxu0 (!%p169_p2), %v1236_v0  ;;  %1212 = vmatprep.subr.bf16.mxu1 (!%p169_p2), %v1236_v0  ;;  %v1239_v3 = vld [vmem:[%s1473_s1 + $0x18] sm:$0xff] (!%p169_p2)   ;;  %v1240_v5 = vld [vmem:[%s1473_s1 + $0x20] sm:$0xff] (!%p169_p2)   ;;  %v1241_v6 = vld [vmem:[%s1473_s1 + $0x28] sm:$0xff] (!%p169_p2)  }
   0x7   : > { %1165 = vmatpush3.bf16.msra.mxu0 (!%p169_p2), %v1236_v0  ;;  %1220 = vmatpush3.bf16.msra.mxu1 (!%p169_p2), %v1236_v0  ;;  %v1242_v8 = vld [vmem:[%s1473_s1 + $0x30] sm:$0xff] (!%p169_p2)   ;;  %v1243_v9 = vld [vmem:[%s1473_s1 + $0x38] sm:$0xff] (!%p169_p2)  }
   0x8   : > { %1166 = vmatprep.subr.bf16.mxu0 (!%p169_p2), %v1237_v1  ;;  %1213 = vmatprep.subr.bf16.mxu1 (!%p169_p2), %v1237_v1 }
   0xb   : > { %1167 = vmatpush3.bf16.msra.mxu0 (!%p169_p2), %v1237_v1  ;;  %1221 = vmatpush3.bf16.msra.mxu1 (!%p169_p2), %v1237_v1 }
   0xc   : > { %1168 = vmatprep.subr.bf16.mxu0 (!%p169_p2), %v1238_v2  ;;  %1214 = vmatprep.subr.bf16.mxu1 (!%p169_p2), %v1238_v2 }
   0xd   : > { %s1478_s19 = smov (!%p201_p3, %s951_s19), 63  ;;  %s1480_s16 = smov (!%p212_p4, %s1299_s16), 1 }
   0xe   : > { %s952_s24 = sshll.u32 %s1478_s19, 2  ;;  %s214_s19 = scalar_lea.vmem %s1475_s3, %s1480_s16 }
   0xf   : > { %s1321_s27 = scalar_lea.vmem %s1472_s0, %s952_s24  ;;  %1169 = vmatpush3.bf16.msra.mxu0 %v1238_v2  ;;  %1222 = vmatpush3.bf16.msra.mxu1 %v1238_v2  ;;  %s1363_s14 = scalar_lea.vmem %s1474_s2, %s952_s24 }
  0x10   : > { %v1244_v4 = vld [vmem:[%s1321_s27] sm:$0xff]   ;;  %1170 = vmatprep.subr.bf16.mxu0 %v1239_v3  ;;  %1215 = vmatprep.subr.bf16.mxu1 %v1239_v3  ;;  %v1245_v10 = vld [vmem:[%s1321_s27 + $0x8] sm:$0xff]   ;;  %v1246_v12 = vld [vmem:[%s1321_s27 + $0x10] sm:$0xff]   ;;  %s217_s22 = scalar_lea.vmem %s1476_s4, %s1480_s16 }
  0x11   : > { %1180 = vmatprep.mubr.bf16.mxu0 %v1244_v4  ;;  %v1252_v7 = vld [vmem:[%s1321_s27 + $0x40] sm:$0xff]   ;;  %v1253_v11 = vld [vmem:[%s1321_s27 + $0x48] sm:$0xff]   ;;  %v1254_v13 = vld [vmem:[%s1321_s27 + $0x50] sm:$0xff]  }
  0x12   : > { %1196 = vmatprep.mubr.bf16.mxu1 %v1252_v7  ;;  %v1247_v14 = vld [vmem:[%s1321_s27 + $0x18] sm:$0xff]   ;;  %v1248_v16 = vld [vmem:[%s1321_s27 + $0x20] sm:$0xff]   ;;  %v1249_v18 = vld [vmem:[%s1321_s27 + $0x28] sm:$0xff]  }
  0x13   : > { %1171 = vmatpush3.bf16.msra.mxu0 %v1239_v3  ;;  %1223 = vmatpush3.bf16.msra.mxu1 %v1239_v3  ;;  %v1255_v15 = vld [vmem:[%s1321_s27 + $0x58] sm:$0xff]   ;;  %v1256_v17 = vld [vmem:[%s1321_s27 + $0x60] sm:$0xff]   ;;  %v1257_v19 = vld [vmem:[%s1321_s27 + $0x68] sm:$0xff]  }
  0x14   : > { %1172 = vmatprep.subr.bf16.mxu0 %v1240_v5  ;;  %1216 = vmatprep.subr.bf16.mxu1 %v1240_v5  ;;  %v1250_v20 = vld [vmem:[%s1321_s27 + $0x30] sm:$0xff]   ;;  %v1251_v22 = vld [vmem:[%s1321_s27 + $0x38] sm:$0xff]  }
  0x15   : > { %v1258_v21 = vld [vmem:[%s1321_s27 + $0x70] sm:$0xff]   ;;  %v1259_v23 = vld [vmem:[%s1321_s27 + $0x78] sm:$0xff]  }
  0x17   : > { %1173 = vmatpush3.bf16.msra.mxu0 %v1240_v5  ;;  %1224 = vmatpush3.bf16.msra.mxu1 %v1240_v5 }
  0x18   : > { %1174 = vmatprep.subr.bf16.mxu0 %v1241_v6  ;;  %1217 = vmatprep.subr.bf16.mxu1 %v1241_v6 }
  0x1b   : > { %1175 = vmatpush3.bf16.msra.mxu0 %v1241_v6  ;;  %1225 = vmatpush3.bf16.msra.mxu1 %v1241_v6 }
  0x1c   : > { %1176 = vmatprep.subr.bf16.mxu0 %v1242_v8  ;;  %1218 = vmatprep.subr.bf16.mxu1 %v1242_v8 }
  0x1f   : > { %1177 = vmatpush3.bf16.msra.mxu0 %v1242_v8  ;;  %1226 = vmatpush3.bf16.msra.mxu1 %v1242_v8 }
  0x20   : > { %1178 = vmatprep.subr.bf16.mxu0 %v1243_v9  ;;  %1219 = vmatprep.subr.bf16.mxu1 %v1243_v9 }
  0x23   : > { %1179 = vmatpush3.bf16.msra.mxu0 %v1243_v9  ;;  %1227 = vmatpush3.bf16.msra.mxu1 %v1243_v9 }
  0x26   : > { %1181 = vmatmul.mubr.bf16.vlgmr.msra.gmra.mrb[0].mxu0 %v1245_v10  ;;  %1197 = vmatmul.mubr.bf16.vlgmr.msra.gmra.mrb[0].mxu1 %v1253_v11 }
  0x27   : > { %1184 = vmatprep.mubr.bf16.mxu0 %v1246_v12  ;;  %1200 = vmatprep.mubr.bf16.mxu1 %v1254_v13 }
  0x2e   : > { %1185 = vmatmul.mubr.bf16.gmra.mrb[4].mxu0 %v1247_v14  ;;  %1201 = vmatmul.mubr.bf16.gmra.mrb[4].mxu1 %v1255_v15 }
  0x2f   : > { %1188 = vmatprep.mubr.bf16.mxu0 %v1248_v16  ;;  %1204 = vmatprep.mubr.bf16.mxu1 %v1256_v17 }
  0x36   : > { %1189 = vmatmul.mubr.bf16.gmra.mrb[8].mxu0 %v1249_v18  ;;  %1205 = vmatmul.mubr.bf16.gmra.mrb[8].mxu1 %v1257_v19 }
  0x37   : > { %1192 = vmatprep.mubr.bf16.mxu0 %v1250_v20  ;;  %1208 = vmatprep.mubr.bf16.mxu1 %v1258_v21 }
  0x3e   : > { %1193 = vmatmul.mubr.bf16.gmra.mrb[12].mxu0 %v1251_v22  ;;  %1209 = vmatmul.mubr.bf16.gmra.mrb[12].mxu1 %v1259_v23 }
  0xf9   : > { %v1182_v24 = vpop.f32.mrb[0].mxu0  ;;  %v1354_v25 = vpop.f32.mrb[0].mxu1 }
  0xfa   : > { %v445_v26 = vpop.f32.mrb[1].mxu0  ;;  %v1356_v27 = vpop.f32.mrb[1].mxu1  ;;  %v772_v39 = vmul.f32 %v1182_v24, %v1182_v24 }
  0xfb   : > { %v1183_v28 = vpop.f32.mrb[2].mxu0  ;;  %v1365_v29 = vpop.f32.mrb[2].mxu1  ;;  %v770_v30 = vmul.f32 %v445_v26, %v445_v26 }
  0xfc   : > { %v1053_v31 = vpack.c.bf16 %v1183_v28, %v1182_v24  ;;  %v448_v32 = vpop.f32.mrb[3].mxu0  ;;  %v1093_v33 = vpack.c.bf16 %v1365_v29, %v1354_v25  ;;  %v1369_v34 = vpop.f32.mrb[3].mxu1  ;;  %v773_v42 = vmul.f32 %v1183_v28, %v1183_v28 }
  0xfd   : > { %v1048_v35 = vpack.c.bf16 %v448_v32, %v445_v26  ;;  %v732_v36 = vadd.f32 %v448_v32, %v445_v26  ;;  %v771_v37 = vmul.f32 %v448_v32, %v448_v32  ;;  %v1088_v38 = vpack.c.bf16 %v1369_v34, %v1356_v27 }
  0xfe   : > { %1125 = vst [vmem:[%s1363_s14 + $0x8] sm:$0xff] %v1053_v31   ;;  %1133 = vst [vmem:[%s1363_s14 + $0x48] sm:$0xff] %v1093_v33  }
  0xff   : > { %1049 = vst [vmem:[%s1363_s14] sm:$0xff] %v1048_v35   ;;  %v733_v40 = vadd.f32 %v1182_v24, %v732_v36  ;;  %v802_v41 = vadd.f32 %v771_v37, %v770_v30  ;;  %1132 = vst [vmem:[%s1363_s14 + $0x40] sm:$0xff] %v1088_v38  }
 0x101   : > { %v803_v43 = vadd.f32 %v802_v41, %v772_v39  ;;  %v1186_v44 = vpop.f32.mrb[4].mxu0  ;;  %v734_v45 = vadd.f32 %v1183_v28, %v733_v40  ;;  %v1377_v46 = vpop.f32.mrb[4].mxu1 }
 0x102   : > { %v461_v47 = vpop.f32.mrb[5].mxu0  ;;  %v1379_v48 = vpop.f32.mrb[5].mxu1  ;;  %v776_v63 = vmul.f32 %v1186_v44, %v1186_v44 }
 0x103   : > { %v735_v49 = vadd.f32 %v734_v45, %v461_v47  ;;  %v774_v50 = vmul.f32 %v461_v47, %v461_v47  ;;  %v804_v51 = vadd.f32 %v803_v43, %v773_v42  ;;  %v1187_v52 = vpop.f32.mrb[6].mxu0  ;;  %v1381_v53 = vpop.f32.mrb[6].mxu1 }
 0x104   : > { %v1063_v54 = vpack.c.bf16 %v1187_v52, %v1186_v44  ;;  %v464_v55 = vpop.f32.mrb[7].mxu0  ;;  %v1103_v56 = vpack.c.bf16 %v1381_v53, %v1377_v46  ;;  %v1385_v57 = vpop.f32.mrb[7].mxu1  ;;  %v777_v2 = vmul.f32 %v1187_v52, %v1187_v52 }
 0x105   : > { %v805_v58 = vadd.f32 %v804_v51, %v774_v50  ;;  %v1058_v59 = vpack.c.bf16 %v464_v55, %v461_v47  ;;  %v736_v60 = vadd.f32 %v735_v49, %v464_v55  ;;  %v775_v61 = vmul.f32 %v464_v55, %v464_v55 }
 0x106   : > { %1127 = vst [vmem:[%s1363_s14 + $0x18] sm:$0xff] %v1063_v54   ;;  %1135 = vst [vmem:[%s1363_s14 + $0x58] sm:$0xff] %v1103_v56   ;;  %v1098_v62 = vpack.c.bf16 %v1385_v57, %v1379_v48 }
 0x107   : > { %1126 = vst [vmem:[%s1363_s14 + $0x10] sm:$0xff] %v1058_v59   ;;  %v737_v0 = vadd.f32 %v1186_v44, %v736_v60  ;;  %v806_v1 = vadd.f32 %v805_v58, %v775_v61  ;;  %v786_v61 = vmul.f32 %v1356_v27, %v1356_v27 }
 0x108   : > { %1134 = vst [vmem:[%s1363_s14 + $0x50] sm:$0xff] %v1098_v62  }
 0x109   : > { %v807_v3 = vadd.f32 %v806_v1, %v776_v63  ;;  %v1190_v4 = vpop.f32.mrb[8].mxu0  ;;  %v738_v5 = vadd.f32 %v1187_v52, %v737_v0  ;;  %v1393_v6 = vpop.f32.mrb[8].mxu1 }
 0x10a   : > { %v477_v7 = vpop.f32.mrb[9].mxu0  ;;  %v1395_v8 = vpop.f32.mrb[9].mxu1  ;;  %v780_v23 = vmul.f32 %v1190_v4, %v1190_v4 }
 0x10b   : > { %v739_v9 = vadd.f32 %v738_v5, %v477_v7  ;;  %v778_v10 = vmul.f32 %v477_v7, %v477_v7  ;;  %v808_v11 = vadd.f32 %v807_v3, %v777_v2  ;;  %v1191_v12 = vpop.f32.mrb[10].mxu0  ;;  %v1397_v13 = vpop.f32.mrb[10].mxu1  ;;  %v787_v2 = vmul.f32 %v1369_v34, %v1369_v34 }
 0x10c   : > { %v1073_v14 = vpack.c.bf16 %v1191_v12, %v1190_v4  ;;  %v480_v15 = vpop.f32.mrb[11].mxu0  ;;  %v1113_v16 = vpack.c.bf16 %v1397_v13, %v1393_v6  ;;  %v1401_v17 = vpop.f32.mrb[11].mxu1  ;;  %v781_v28 = vmul.f32 %v1191_v12, %v1191_v12  ;;  %v788_v3 = vmul.f32 %v1354_v25, %v1354_v25 }
 0x10d   : > { %v809_v18 = vadd.f32 %v808_v11, %v778_v10  ;;  %v1068_v19 = vpack.c.bf16 %v480_v15, %v477_v7  ;;  %v740_v20 = vadd.f32 %v739_v9, %v480_v15  ;;  %v779_v21 = vmul.f32 %v480_v15, %v480_v15 }
 0x10e   : > { %1129 = vst [vmem:[%s1363_s14 + $0x28] sm:$0xff] %v1073_v14   ;;  %1137 = vst [vmem:[%s1363_s14 + $0x68] sm:$0xff] %v1113_v16   ;;  %v1108_v22 = vpack.c.bf16 %v1401_v17, %v1395_v8  ;;  %v789_v7 = vmul.f32 %v1365_v29, %v1365_v29  ;;  %v791_v15 = vmul.f32 %v1385_v57, %v1385_v57 }
 0x10f   : > { %1128 = vst [vmem:[%s1363_s14 + $0x20] sm:$0xff] %v1068_v19   ;;  %v741_v24 = vadd.f32 %v1190_v4, %v740_v20  ;;  %v810_v26 = vadd.f32 %v809_v18, %v779_v21 }
 0x110   : > { %1136 = vst [vmem:[%s1363_s14 + $0x60] sm:$0xff] %v1108_v22  }
 0x111   : > { %v811_v30 = vadd.f32 %v810_v26, %v780_v23  ;;  %v1194_v31 = vpop.f32.mrb[12].mxu0  ;;  %v742_v32 = vadd.f32 %v1191_v12, %v741_v24  ;;  %v1409_v33 = vpop.f32.mrb[12].mxu1  ;;  %v795_v24 = vmul.f32 %v1401_v17, %v1401_v17 }
 0x112   : > { %v493_v35 = vpop.f32.mrb[13].mxu0  ;;  %v557_v36 = vpop.f32.mrb[13].mxu1  ;;  %v784_v54 = vmul.f32 %v1194_v31, %v1194_v31 }
 0x113   : > { %v743_v37 = vadd.f32 %v742_v32, %v493_v35  ;;  %v782_v38 = vmul.f32 %v493_v35, %v493_v35  ;;  %v812_v39 = vadd.f32 %v811_v30, %v781_v28  ;;  %v1195_v40 = vpop.f32.mrb[14].mxu0  ;;  %v1411_v41 = vpop.f32.mrb[14].mxu1 }
 0x114   : > { %v1083_v42 = vpack.c.bf16 %v1195_v40, %v1194_v31  ;;  %v496_v43 = vpop.f32.mrb[15].mxu0  ;;  %v1123_v44 = vpack.c.bf16 %v1411_v41, %v1409_v33  ;;  %v560_v45 = vpop.f32.mrb[15].mxu1  ;;  %v785_v58 = vmul.f32 %v1195_v40, %v1195_v40 }
 0x115   : > { %v813_v47 = vadd.f32 %v812_v39, %v782_v38  ;;  %v1078_v49 = vpack.c.bf16 %v496_v43, %v493_v35  ;;  %v744_v50 = vadd.f32 %v743_v37, %v496_v43  ;;  %v783_v51 = vmul.f32 %v496_v43, %v496_v43 }
 0x116   : > { %1131 = vst [vmem:[%s1363_s14 + $0x38] sm:$0xff] %v1083_v42   ;;  %1139 = vst [vmem:[%s1363_s14 + $0x78] sm:$0xff] %v1123_v44   ;;  %v1118_v52 = vpack.c.bf16 %v560_v45, %v557_v36  ;;  %v800_v39 = vmul.f32 %v1409_v33, %v1409_v33  ;;  %v801_v42 = vmul.f32 %v1411_v41, %v1411_v41 }
 0x117   : > { %1130 = vst [vmem:[%s1363_s14 + $0x30] sm:$0xff] %v1078_v49   ;;  %v745_v55 = vadd.f32 %v1194_v31, %v744_v50  ;;  %v814_v56 = vadd.f32 %v813_v47, %v783_v51  ;;  %v798_v31 = vmul.f32 %v557_v36, %v557_v36 }
 0x118   : > { %1138 = vst [vmem:[%s1363_s14 + $0x70] sm:$0xff] %v1118_v52  }
 0x119   : > { %v815_v59 = vadd.f32 %v814_v56, %v784_v54  ;;  %v746_v60 = vadd.f32 %v1195_v40, %v745_v55 }
 0x11b   : > { %v747_v62 = vadd.f32 %v746_v60, %v1356_v27  ;;  %v816_v63 = vadd.f32 %v815_v59, %v785_v58  ;;  %v790_v27 = vmul.f32 %v1379_v48, %v1379_v48 }
 0x11d   : > { %v817_v0 = vadd.f32 %v816_v63, %v786_v61  ;;  %v748_v1 = vadd.f32 %v747_v62, %v1369_v34 }
 0x11f   : > { %v749_v4 = vadd.f32 %v1354_v25, %v748_v1  ;;  %v818_v5 = vadd.f32 %v817_v0, %v787_v2  ;;  %v792_v25 = vmul.f32 %v1377_v46, %v1377_v46 }
 0x121   : > { %v819_v9 = vadd.f32 %v818_v5, %v788_v3  ;;  %v750_v10 = vadd.f32 %v1365_v29, %v749_v4  ;;  %v793_v29 = vmul.f32 %v1381_v53, %v1381_v53 }
 0x123   : > { %v751_v11 = vadd.f32 %v750_v10, %v1379_v48  ;;  %v820_v12 = vadd.f32 %v819_v9, %v789_v7  ;;  %v794_v48 = vmul.f32 %v1395_v8, %v1395_v8 }
 0x125   : > { %v821_v14 = vadd.f32 %v820_v12, %v790_v27  ;;  %v752_v34 = vadd.f32 %v751_v11, %v1385_v57 }
 0x127   : > { %v753_v16 = vadd.f32 %v1377_v46, %v752_v34  ;;  %v822_v18 = vadd.f32 %v821_v14, %v791_v15  ;;  %v796_v46 = vmul.f32 %v1393_v6, %v1393_v6 }
 0x129   : > { %v823_v19 = vadd.f32 %v822_v18, %v792_v25  ;;  %v754_v20 = vadd.f32 %v1381_v53, %v753_v16  ;;  %v797_v53 = vmul.f32 %v1397_v13, %v1397_v13 }
 0x12b   : > { %v755_v21 = vadd.f32 %v754_v20, %v1395_v8  ;;  %v824_v22 = vadd.f32 %v823_v19, %v793_v29 }
 0x12d   : > { %v825_v23 = vadd.f32 %v824_v22, %v794_v48  ;;  %v756_v57 = vadd.f32 %v755_v21, %v1401_v17  ;;  %v799_v17 = vmul.f32 %v560_v45, %v560_v45 }
 0x12f   : > { %v757_v26 = vadd.f32 %v1393_v6, %v756_v57  ;;  %v826_v28 = vadd.f32 %v825_v23, %v795_v24 }
 0x131   : > { %v827_v30 = vadd.f32 %v826_v28, %v796_v46  ;;  %v758_v8 = vadd.f32 %v1397_v13, %v757_v26 }
 0x133   : > { %v759_v32 = vadd.f32 %v758_v8, %v557_v36  ;;  %v828_v35 = vadd.f32 %v827_v30, %v797_v53 }
 0x135   : > { %v829_v37 = vadd.f32 %v828_v35, %v798_v31  ;;  %v760_v38 = vadd.f32 %v759_v32, %v560_v45 }
 0x137   : > { %v761_v6 = vadd.f32 %v1409_v33, %v760_v38  ;;  %v830_v40 = vadd.f32 %v829_v37, %v799_v17 }
 0x139   : > { %v762_v43 = vadd.f32 %v1411_v41, %v761_v6  ;;  %v831_v44 = vadd.f32 %v830_v40, %v800_v39 }
 0x13b   : > { %v763_v13 = vrot.slane %v762_v43, 4  ;;  %v832_v47 = vadd.f32 %v831_v44, %v801_v42 }
 0x13d   : > { %v764_v36 = vadd.f32 %v763_v13, %v762_v43  ;;  %v833_v49 = vrot.slane %v832_v47, 4 }
 0x13f   : > { %v765_v50 = vrot.slane %v764_v36, 2  ;;  %v834_v51 = vadd.f32 %v833_v49, %v832_v47 }
 0x141   : > { %v766_v45 = vadd.f32 %v765_v50, %v764_v36  ;;  %v835_v52 = vrot.slane %v834_v51, 2 }
 0x143   : > { %v767_v54 = vrot.slane %v766_v45, 1  ;;  %v836_v55 = vadd.f32 %v835_v52, %v834_v51 }
 0x145   : > { %v768_v33 = vadd.f32 %v767_v54, %v766_v45  ;;  %v837_v56 = vrot.slane %v836_v55, 1 }
 0x147   : > { %769 = vst [vmem:[%s214_s19] sm:$0x1] %v768_v33  ;;  %v838_v41 = vadd.f32 %v837_v56, %v836_v55 }
 0x149   : > { %839 = vst [vmem:[%s217_s22] sm:$0x1] %v838_v41 }
 0x14a PF: > { %s15_s15 = sadd.s32 1, %s1266_s15  }
 0x14b   : > { %p12_p5 = scmp.ge.s32.totalorder %s15_s15, 4  }
 0x14d   :  { %14 = sbr.rel (!%p12_p5) target bundleno = 1 (0x1), region = 82 }

// kernel: basic_block_forward.9
= control target key start
LH: loop header
LB: loop body
LE: loop exit
PB: predicated region body
PF: predicated region fallthrough
CT: control target
= control target key end

     0   :  { %s819_s12 = smov 0   ;;  %s953_s0 = inlined_call_operand.vmem [shape: bf16[512,128], index: 0, kind: input, shape index: {}]   ;;  %s954_s1 = inlined_call_operand.vmem [shape: f32[1,128], index: 1, kind: input, shape index: {}]   ;;  %s955_s2 = inlined_call_operand.vmem [shape: f32[1,128], index: 2, kind: input, shape index: {}]   ;;  %s956_s3 = inlined_call_operand.vmem [shape: bf16[512,128], index: 3, kind: output, shape index: {}]  }
   0x1 LB: > { %s532_s13 = sadd.s32 4294967295, %s797_s12   ;;  %p536_p0 = scmp.ge.s32.totalorder %s797_s12, 1  ;;  %s797_s12 = sphi %s819_s12, %s13_s12  }
   0x2   : > { %p138_p1 = scmp.lt.s32.totalorder %s797_s12, 3 }
   0x4   : > { %p139_p2 = pnand %p536_p0, %p138_p1 }
   0x5   : > { %s537_s14 = sshll.u32 (!%p139_p2), %s532_s13, 5  ;;  %v840_v0 = vld [vmem:[%s954_s1] ss:$0 sm:$0xff] (!%p139_p2) }
   0x6   : > { %142 = sbr.rel (%p139_p2) target bundleno = 50 (0x32), region = 32  ;;  %p163_p3 = scmp.lt.s32.totalorder (!%p139_p2), %s537_s14, 63  ;;  %v849_v9 = vld [vmem:[%s955_s2] ss:$0 sm:$0xff] (!%p139_p2) }
   0xd   : > { %s958_s14 = smov (!%p163_p3, %s537_s14), 63 }
   0xe   : > { %s538_s15 = sshll.u32 %s958_s14, 2 }
   0xf   : > { %s835_s18 = scalar_lea.vmem %s953_s0, %s538_s15  ;;  %s870_s25 = scalar_lea.vmem %s956_s3, %s538_s15 }
  0x10   : > { %v610_v1 = vld [vmem:[%s835_s18] sm:$0xff]   ;;  %v753_v2 = vld [vmem:[%s835_s18 + $0x8] sm:$0xff]   ;;  %v754_v3 = vld [vmem:[%s835_s18 + $0x10] sm:$0xff]  }
  0x11   : > { %v611_v4 = vunpack.c.l.bf16 %v610_v1  ;;  %v612_v5 = vunpack.c.h.bf16 %v610_v1  ;;  %v615_v6 = vunpack.c.l.bf16 %v753_v2  ;;  %v616_v7 = vunpack.c.h.bf16 %v753_v2  ;;  %v755_v8 = vld [vmem:[%s835_s18 + $0x18] sm:$0xff]   ;;  %v756_v22 = vld [vmem:[%s835_s18 + $0x20] sm:$0xff]   ;;  %v757_v27 = vld [vmem:[%s835_s18 + $0x28] sm:$0xff]  }
  0x12   : > { %v619_v10 = vunpack.c.l.bf16 %v754_v3  ;;  %v620_v11 = vunpack.c.h.bf16 %v754_v3  ;;  %v623_v12 = vunpack.c.l.bf16 %v755_v8  ;;  %v624_v13 = vunpack.c.h.bf16 %v755_v8  ;;  %v758_v32 = vld [vmem:[%s835_s18 + $0x30] sm:$0xff]   ;;  %v759_v37 = vld [vmem:[%s835_s18 + $0x38] sm:$0xff]   ;;  %v760_v50 = vld [vmem:[%s835_s18 + $0x40] sm:$0xff]  }
  0x13   : > { %v245_v14 = vmul.f32 %v611_v4, %v840_v0  ;;  %v246_v15 = vmul.f32 %v612_v5, %v840_v0  ;;  %v247_v16 = vmul.f32 %v615_v6, %v840_v0  ;;  %v248_v17 = vmul.f32 %v616_v7, %v840_v0  ;;  %v761_v59 = vld [vmem:[%s835_s18 + $0x48] sm:$0xff]   ;;  %v762_v1 = vld [vmem:[%s835_s18 + $0x50] sm:$0xff]   ;;  %v763_v6 = vld [vmem:[%s835_s18 + $0x58] sm:$0xff]  }
  0x14   : > { %v249_v18 = vmul.f32 %v619_v10, %v840_v0  ;;  %v250_v19 = vmul.f32 %v620_v11, %v840_v0  ;;  %v251_v20 = vmul.f32 %v623_v12, %v840_v0  ;;  %v252_v21 = vmul.f32 %v624_v13, %v840_v0 }
  0x15   : > { %v284_v23 = vadd.f32 %v849_v9, %v245_v14  ;;  %v285_v24 = vadd.f32 %v849_v9, %v246_v15  ;;  %v286_v25 = vadd.f32 %v849_v9, %v247_v16  ;;  %v287_v26 = vadd.f32 %v849_v9, %v248_v17  ;;  %v764_v16 = vld [vmem:[%s835_s18 + $0x60] sm:$0xff]  }
  0x16   : > { %v288_v28 = vadd.f32 %v849_v9, %v249_v18  ;;  %v289_v29 = vadd.f32 %v849_v9, %v250_v19  ;;  %v290_v30 = vadd.f32 %v849_v9, %v251_v20  ;;  %v291_v31 = vadd.f32 %v849_v9, %v252_v21 }
  0x17   : > { %v676_v33 = vpack.c.bf16 %v285_v24, %v284_v23  ;;  %v681_v34 = vpack.c.bf16 %v287_v26, %v286_v25  ;;  %v627_v35 = vunpack.c.l.bf16 %v756_v22  ;;  %v628_v36 = vunpack.c.h.bf16 %v756_v22 }
  0x18   : > { %v686_v38 = vpack.c.bf16 %v289_v29, %v288_v28  ;;  %v691_v39 = vpack.c.bf16 %v291_v31, %v290_v30  ;;  %v631_v40 = vunpack.c.l.bf16 %v757_v27  ;;  %v632_v41 = vunpack.c.h.bf16 %v757_v27  ;;  %v765_v29 = vld [vmem:[%s835_s18 + $0x68] sm:$0xff]  }
  0x19   : > { %677 = vst [vmem:[%s870_s25] sm:$0xff] %v676_v33   ;;  %768 = vst [vmem:[%s870_s25 + $0x8] sm:$0xff] %v681_v34   ;;  %v253_v42 = vmul.f32 %v627_v35, %v840_v0  ;;  %v254_v43 = vmul.f32 %v628_v36, %v840_v0  ;;  %v635_v44 = vunpack.c.l.bf16 %v758_v32  ;;  %v636_v45 = vunpack.c.h.bf16 %v758_v32  ;;  %v766_v34 = vld [vmem:[%s835_s18 + $0x70] sm:$0xff]  }
  0x1a   : > { %769 = vst [vmem:[%s870_s25 + $0x10] sm:$0xff] %v686_v38   ;;  %770 = vst [vmem:[%s870_s25 + $0x18] sm:$0xff] %v691_v39   ;;  %v255_v46 = vmul.f32 %v631_v40, %v840_v0  ;;  %v256_v47 = vmul.f32 %v632_v41, %v840_v0  ;;  %v639_v48 = vunpack.c.l.bf16 %v759_v37  ;;  %v640_v49 = vunpack.c.h.bf16 %v759_v37  ;;  %v767_v39 = vld [vmem:[%s835_s18 + $0x78] sm:$0xff]  }
  0x1b   : > { %v292_v51 = vadd.f32 %v849_v9, %v253_v42  ;;  %v293_v52 = vadd.f32 %v849_v9, %v254_v43  ;;  %v257_v53 = vmul.f32 %v635_v44, %v840_v0  ;;  %v258_v54 = vmul.f32 %v636_v45, %v840_v0 }
  0x1c   : > { %v294_v55 = vadd.f32 %v849_v9, %v255_v46  ;;  %v295_v56 = vadd.f32 %v849_v9, %v256_v47  ;;  %v259_v57 = vmul.f32 %v639_v48, %v840_v0  ;;  %v260_v58 = vmul.f32 %v640_v49, %v840_v0 }
  0x1d   : > { %v696_v60 = vpack.c.bf16 %v293_v52, %v292_v51  ;;  %v296_v61 = vadd.f32 %v849_v9, %v257_v53  ;;  %v297_v62 = vadd.f32 %v849_v9, %v258_v54  ;;  %v643_v63 = vunpack.c.l.bf16 %v760_v50 }
  0x1e   : > { %v701_v2 = vpack.c.bf16 %v295_v56, %v294_v55  ;;  %v298_v3 = vadd.f32 %v849_v9, %v259_v57  ;;  %v299_v4 = vadd.f32 %v849_v9, %v260_v58  ;;  %v644_v5 = vunpack.c.h.bf16 %v760_v50 }
  0x1f   : > { %771 = vst [vmem:[%s870_s25 + $0x20] sm:$0xff] %v696_v60   ;;  %v706_v7 = vpack.c.bf16 %v297_v62, %v296_v61  ;;  %v261_v8 = vmul.f32 %v643_v63, %v840_v0  ;;  %v647_v10 = vunpack.c.l.bf16 %v761_v59  ;;  %v648_v11 = vunpack.c.h.bf16 %v761_v59 }
  0x20   : > { %772 = vst [vmem:[%s870_s25 + $0x28] sm:$0xff] %v701_v2   ;;  %v711_v12 = vpack.c.bf16 %v299_v4, %v298_v3  ;;  %v262_v13 = vmul.f32 %v644_v5, %v840_v0  ;;  %v651_v14 = vunpack.c.l.bf16 %v762_v1  ;;  %v652_v15 = vunpack.c.h.bf16 %v762_v1 }
  0x21   : > { %773 = vst [vmem:[%s870_s25 + $0x30] sm:$0xff] %v706_v7   ;;  %v300_v17 = vadd.f32 %v849_v9, %v261_v8  ;;  %v263_v18 = vmul.f32 %v647_v10, %v840_v0  ;;  %v264_v19 = vmul.f32 %v648_v11, %v840_v0  ;;  %v655_v20 = vunpack.c.l.bf16 %v763_v6 }
  0x22   : > { %774 = vst [vmem:[%s870_s25 + $0x38] sm:$0xff] %v711_v12   ;;  %v301_v21 = vadd.f32 %v849_v9, %v262_v13  ;;  %v265_v22 = vmul.f32 %v651_v14, %v840_v0  ;;  %v266_v23 = vmul.f32 %v652_v15, %v840_v0  ;;  %v656_v24 = vunpack.c.h.bf16 %v763_v6 }
  0x23   : > { %v302_v25 = vadd.f32 %v849_v9, %v263_v18  ;;  %v303_v26 = vadd.f32 %v849_v9, %v264_v19  ;;  %v267_v27 = vmul.f32 %v655_v20, %v840_v0  ;;  %v659_v28 = vunpack.c.l.bf16 %v764_v16 }
  0x24   : > { %v716_v30 = vpack.c.bf16 %v301_v21, %v300_v17  ;;  %v304_v31 = vadd.f32 %v849_v9, %v265_v22  ;;  %v305_v32 = vadd.f32 %v849_v9, %v266_v23  ;;  %v268_v33 = vmul.f32 %v656_v24, %v840_v0 }
  0x25   : > { %v721_v35 = vpack.c.bf16 %v303_v26, %v302_v25  ;;  %v306_v36 = vadd.f32 %v849_v9, %v267_v27  ;;  %v660_v37 = vunpack.c.h.bf16 %v764_v16  ;;  %v269_v38 = vmul.f32 %v659_v28, %v840_v0 }
  0x26   : > { %775 = vst [vmem:[%s870_s25 + $0x40] sm:$0xff] %v716_v30   ;;  %v726_v40 = vpack.c.bf16 %v305_v32, %v304_v31  ;;  %v307_v41 = vadd.f32 %v849_v9, %v268_v33  ;;  %v663_v42 = vunpack.c.l.bf16 %v765_v29  ;;  %v664_v43 = vunpack.c.h.bf16 %v765_v29 }
  0x27   : > { %776 = vst [vmem:[%s870_s25 + $0x48] sm:$0xff] %v721_v35   ;;  %v270_v44 = vmul.f32 %v660_v37, %v840_v0  ;;  %v308_v45 = vadd.f32 %v849_v9, %v269_v38  ;;  %v667_v46 = vunpack.c.l.bf16 %v766_v34  ;;  %v668_v47 = vunpack.c.h.bf16 %v766_v34 }
  0x28   : > { %777 = vst [vmem:[%s870_s25 + $0x50] sm:$0xff] %v726_v40   ;;  %v731_v48 = vpack.c.bf16 %v307_v41, %v306_v36  ;;  %v271_v49 = vmul.f32 %v663_v42, %v840_v0  ;;  %v272_v50 = vmul.f32 %v664_v43, %v840_v0  ;;  %v671_v51 = vunpack.c.l.bf16 %v767_v39 }
  0x29   : > { %v309_v52 = vadd.f32 %v849_v9, %v270_v44  ;;  %v273_v53 = vmul.f32 %v667_v46, %v840_v0  ;;  %v274_v54 = vmul.f32 %v668_v47, %v840_v0  ;;  %v672_v55 = vunpack.c.h.bf16 %v767_v39 }
  0x2a   : > { %778 = vst [vmem:[%s870_s25 + $0x58] sm:$0xff] %v731_v48   ;;  %v310_v56 = vadd.f32 %v849_v9, %v271_v49  ;;  %v311_v57 = vadd.f32 %v849_v9, %v272_v50  ;;  %v275_v58 = vmul.f32 %v671_v51, %v840_v0 }
  0x2b   : > { %v736_v59 = vpack.c.bf16 %v309_v52, %v308_v45  ;;  %v312_v60 = vadd.f32 %v849_v9, %v273_v53  ;;  %v313_v61 = vadd.f32 %v849_v9, %v274_v54  ;;  %v276_v62 = vmul.f32 %v672_v55, %v840_v0 }
  0x2c   : > { %v741_v63 = vpack.c.bf16 %v311_v57, %v310_v56  ;;  %v314_v1 = vadd.f32 %v849_v9, %v275_v58 }
  0x2d   : > { %779 = vst [vmem:[%s870_s25 + $0x60] sm:$0xff] %v736_v59   ;;  %v746_v2 = vpack.c.bf16 %v313_v61, %v312_v60  ;;  %v315_v3 = vadd.f32 %v849_v9, %v276_v62 }
  0x2e   : > { %780 = vst [vmem:[%s870_s25 + $0x68] sm:$0xff] %v741_v63  }
  0x2f   : > { %781 = vst [vmem:[%s870_s25 + $0x70] sm:$0xff] %v746_v2   ;;  %v751_v4 = vpack.c.bf16 %v315_v3, %v314_v1 }
  0x31   : > { %782 = vst [vmem:[%s870_s25 + $0x78] sm:$0xff] %v751_v4  }
  0x32 PF: > { %s13_s12 = sadd.s32 1, %s797_s12  }
  0x33   : > { %p10_p4 = scmp.ge.s32.totalorder %s13_s12, 4  }
  0x35   :  { %12 = sbr.rel (!%p10_p4) target bundleno = 1 (0x1), region = 62 }

// kernel: basic_block_forward.11
= control target key start
LH: loop header
LB: loop body
LE: loop exit
PB: predicated region body
PF: predicated region fallthrough
CT: control target
= control target key end

     0   :  { %s1094_s15 = smov 0   ;;  %s1247_s0 = inlined_call_operand.vmem [shape: bf16[512,128], index: 0, kind: input, shape index: {}]   ;;  %s1248_s1 = inlined_call_operand.vmem [shape: f32[1,128], index: 1, kind: input, shape index: {}]   ;;  %s1249_s2 = inlined_call_operand.vmem [shape: f32[1,128], index: 2, kind: input, shape index: {}]   ;;  %s1250_s3 = inlined_call_operand.vmem [shape: bf16[512,128], index: 3, kind: input, shape index: {}]   ;;  %s1251_s4 = inlined_call_operand.vmem [shape: bf16[512,128], index: 4, kind: output, shape index: {}]  }
   0x1 LB: > { %s721_s16 = sadd.s32 4294967295, %s1067_s15   ;;  %p725_p0 = scmp.ge.s32.totalorder %s1067_s15, 1  ;;  %s1067_s15 = sphi %s1094_s15, %s14_s15  }
   0x2   : > { %p174_p1 = scmp.lt.s32.totalorder %s1067_s15, 3 }
   0x4   : > { %p175_p2 = pnand %p725_p0, %p174_p1 }
   0x5   : > { %s726_s17 = sshll.u32 (!%p175_p2), %s721_s16, 5  ;;  %v1119_v0 = vld [vmem:[%s1248_s1] ss:$0 sm:$0xff] (!%p175_p2) }
   0x6   : > { %178 = sbr.rel (%p175_p2) target bundleno = 76 (0x4c), region = 36  ;;  %p206_p3 = scmp.lt.s32.totalorder (!%p175_p2), %s726_s17, 63  ;;  %v1130_v11 = vld [vmem:[%s1249_s2] ss:$0 sm:$0xff] (!%p175_p2) }
   0xd   : > { %s1253_s17 = smov (!%p206_p3, %s726_s17), 63 }
   0xe   : > { %s1102_s18 = sshll.u32 %s1253_s17, 2 }
   0xf   : > { %s1108_s21 = scalar_lea.vmem %s1247_s0, %s1102_s18  ;;  %s1114_s24 = scalar_lea.vmem %s1250_s3, %s1102_s18 }
  0x10   : > { %v801_v1 = vld [vmem:[%s1108_s21] sm:$0xff]   ;;  %v1008_v3 = vld [vmem:[%s1108_s21 + $0x8] sm:$0xff]   ;;  %v1009_v9 = vld [vmem:[%s1108_s21 + $0x10] sm:$0xff]   ;;  %s1153_s5 = scalar_lea.vmem %s1251_s4, %s1102_s18 }
  0x11   : > { %v865_v2 = vld [vmem:[%s1114_s24] sm:$0xff]   ;;  %v802_v4 = vunpack.c.l.bf16 %v801_v1  ;;  %v803_v5 = vunpack.c.h.bf16 %v801_v1  ;;  %v1023_v8 = vld [vmem:[%s1114_s24 + $0x8] sm:$0xff]   ;;  %v1024_v10 = vld [vmem:[%s1114_s24 + $0x10] sm:$0xff]   ;;  %v806_v12 = vunpack.c.l.bf16 %v1008_v3  ;;  %v807_v13 = vunpack.c.h.bf16 %v1008_v3 }
  0x12   : > { %v866_v6 = vunpack.c.l.bf16 %v865_v2  ;;  %v867_v7 = vunpack.c.h.bf16 %v865_v2  ;;  %v870_v14 = vunpack.c.l.bf16 %v1023_v8  ;;  %v871_v15 = vunpack.c.h.bf16 %v1023_v8  ;;  %v1010_v20 = vld [vmem:[%s1108_s21 + $0x18] sm:$0xff]   ;;  %v1011_v46 = vld [vmem:[%s1108_s21 + $0x20] sm:$0xff]   ;;  %v1012_v56 = vld [vmem:[%s1108_s21 + $0x28] sm:$0xff]  }
  0x13   : > { %v294_v16 = vmul.f32 %v802_v4, %v1119_v0  ;;  %v295_v17 = vmul.f32 %v803_v5, %v1119_v0  ;;  %v810_v18 = vunpack.c.l.bf16 %v1009_v9  ;;  %v811_v19 = vunpack.c.h.bf16 %v1009_v9  ;;  %v1025_v41 = vld [vmem:[%s1114_s24 + $0x18] sm:$0xff]   ;;  %v1026_v51 = vld [vmem:[%s1114_s24 + $0x20] sm:$0xff]   ;;  %v1027_v61 = vld [vmem:[%s1114_s24 + $0x28] sm:$0xff]  }
  0x14   : > { %v296_v21 = vmul.f32 %v806_v12, %v1119_v0  ;;  %v297_v22 = vmul.f32 %v807_v13, %v1119_v0  ;;  %v874_v23 = vunpack.c.l.bf16 %v1024_v10  ;;  %v875_v24 = vunpack.c.h.bf16 %v1024_v10  ;;  %v1028_v8 = vld [vmem:[%s1114_s24 + $0x30] sm:$0xff]  }
  0x15   : > { %v333_v25 = vadd.f32 %v1130_v11, %v294_v16  ;;  %v334_v26 = vadd.f32 %v1130_v11, %v295_v17  ;;  %v298_v27 = vmul.f32 %v810_v18, %v1119_v0  ;;  %v299_v28 = vmul.f32 %v811_v19, %v1119_v0 }
  0x16   : > { %v335_v29 = vadd.f32 %v1130_v11, %v296_v21  ;;  %v336_v30 = vadd.f32 %v1130_v11, %v297_v22  ;;  %v814_v31 = vunpack.c.l.bf16 %v1010_v20  ;;  %v815_v32 = vunpack.c.h.bf16 %v1010_v20  ;;  %v1014_v22 = vld [vmem:[%s1108_s21 + $0x38] sm:$0xff]  }
  0x17   : > { %v429_v33 = vadd.f32 %v866_v6, %v333_v25  ;;  %v430_v34 = vadd.f32 %v867_v7, %v334_v26  ;;  %v337_v35 = vadd.f32 %v1130_v11, %v298_v27  ;;  %v338_v36 = vadd.f32 %v1130_v11, %v299_v28  ;;  %v1013_v7 = vld [vmem:[%s1108_s21 + $0x30] sm:$0xff]  }
  0x18   : > { %v431_v37 = vadd.f32 %v870_v14, %v335_v29  ;;  %v432_v38 = vadd.f32 %v871_v15, %v336_v30  ;;  %v300_v39 = vmul.f32 %v814_v31, %v1119_v0  ;;  %v301_v40 = vmul.f32 %v815_v32, %v1119_v0  ;;  %v1029_v31 = vld [vmem:[%s1114_s24 + $0x38] sm:$0xff]  }
  0x19   : > { %v461_v42 = vmax.f32 %v429_v33, 0.0  ;;  %v462_v43 = vmax.f32 %v430_v34, 0.0  ;;  %v433_v44 = vadd.f32 %v874_v23, %v337_v35  ;;  %v434_v45 = vadd.f32 %v875_v24, %v338_v36 }
  0x1a   : > { %v463_v47 = vmax.f32 %v431_v37, 0.0  ;;  %v464_v48 = vmax.f32 %v432_v38, 0.0  ;;  %v339_v49 = vadd.f32 %v1130_v11, %v300_v39  ;;  %v340_v50 = vadd.f32 %v1130_v11, %v301_v40  ;;  %v1015_v40 = vld [vmem:[%s1108_s21 + $0x40] sm:$0xff]  }
  0x1b   : > { %v931_v52 = vpack.c.bf16 %v462_v43, %v461_v42  ;;  %v465_v53 = vmax.f32 %v433_v44, 0.0  ;;  %v466_v54 = vmax.f32 %v434_v45, 0.0  ;;  %v878_v55 = vunpack.c.l.bf16 %v1025_v41 }
  0x1c   : > { %v936_v57 = vpack.c.bf16 %v464_v48, %v463_v47  ;;  %v879_v58 = vunpack.c.h.bf16 %v1025_v41  ;;  %v818_v59 = vunpack.c.l.bf16 %v1011_v46  ;;  %v819_v60 = vunpack.c.h.bf16 %v1011_v46 }
  0x1d   : > { %932 = vst [vmem:[%s1153_s5] sm:$0xff] %v931_v52   ;;  %v941_v62 = vpack.c.bf16 %v466_v54, %v465_v53  ;;  %v435_v63 = vadd.f32 %v878_v55, %v339_v49  ;;  %v882_v1 = vunpack.c.l.bf16 %v1026_v51  ;;  %v883_v2 = vunpack.c.h.bf16 %v1026_v51  ;;  %v1030_v49 = vld [vmem:[%s1114_s24 + $0x40] sm:$0xff]   ;;  %v1016_v54 = vld [vmem:[%s1108_s21 + $0x48] sm:$0xff]  }
  0x1e   : > { %1038 = vst [vmem:[%s1153_s5 + $0x8] sm:$0xff] %v936_v57   ;;  %v436_v3 = vadd.f32 %v879_v58, %v340_v50  ;;  %v302_v4 = vmul.f32 %v818_v59, %v1119_v0  ;;  %v303_v5 = vmul.f32 %v819_v60, %v1119_v0  ;;  %v822_v6 = vunpack.c.l.bf16 %v1012_v56 }
  0x1f   : > { %1039 = vst [vmem:[%s1153_s5 + $0x10] sm:$0xff] %v941_v62   ;;  %v467_v9 = vmax.f32 %v435_v63, 0.0  ;;  %v823_v10 = vunpack.c.h.bf16 %v1012_v56  ;;  %v886_v12 = vunpack.c.l.bf16 %v1027_v61  ;;  %v887_v13 = vunpack.c.h.bf16 %v1027_v61  ;;  %v1031_v63 = vld [vmem:[%s1114_s24 + $0x48] sm:$0xff]  }
  0x20   : > { %v468_v14 = vmax.f32 %v436_v3, 0.0  ;;  %v341_v15 = vadd.f32 %v1130_v11, %v302_v4  ;;  %v342_v16 = vadd.f32 %v1130_v11, %v303_v5  ;;  %v304_v17 = vmul.f32 %v822_v6, %v1119_v0  ;;  %v1017_v5 = vld [vmem:[%s1108_s21 + $0x50] sm:$0xff]  }
  0x21   : > { %v305_v18 = vmul.f32 %v823_v10, %v1119_v0  ;;  %v826_v19 = vunpack.c.l.bf16 %v1013_v7  ;;  %v827_v20 = vunpack.c.h.bf16 %v1013_v7  ;;  %v890_v21 = vunpack.c.l.bf16 %v1028_v8  ;;  %v1032_v10 = vld [vmem:[%s1114_s24 + $0x50] sm:$0xff]  }
  0x22   : > { %v946_v23 = vpack.c.bf16 %v468_v14, %v467_v9  ;;  %v437_v24 = vadd.f32 %v882_v1, %v341_v15  ;;  %v438_v25 = vadd.f32 %v883_v2, %v342_v16  ;;  %v343_v26 = vadd.f32 %v1130_v11, %v304_v17 }
  0x23   : > { %v344_v27 = vadd.f32 %v1130_v11, %v305_v18  ;;  %v306_v28 = vmul.f32 %v826_v19, %v1119_v0  ;;  %v307_v29 = vmul.f32 %v827_v20, %v1119_v0  ;;  %v891_v30 = vunpack.c.h.bf16 %v1028_v8  ;;  %v1018_v20 = vld [vmem:[%s1108_s21 + $0x58] sm:$0xff]  }
  0x24   : > { %1040 = vst [vmem:[%s1153_s5 + $0x18] sm:$0xff] %v946_v23   ;;  %v469_v32 = vmax.f32 %v437_v24, 0.0  ;;  %v470_v33 = vmax.f32 %v438_v25, 0.0  ;;  %v439_v34 = vadd.f32 %v886_v12, %v343_v26  ;;  %v830_v35 = vunpack.c.l.bf16 %v1014_v22 }
  0x25   : > { %v440_v36 = vadd.f32 %v887_v13, %v344_v27  ;;  %v345_v37 = vadd.f32 %v1130_v11, %v306_v28  ;;  %v346_v38 = vadd.f32 %v1130_v11, %v307_v29  ;;  %v831_v39 = vunpack.c.h.bf16 %v1014_v22  ;;  %v1033_v29 = vld [vmem:[%s1114_s24 + $0x58] sm:$0xff]  }
  0x26   : > { %v951_v41 = vpack.c.bf16 %v470_v33, %v469_v32  ;;  %v471_v42 = vmax.f32 %v439_v34, 0.0  ;;  %v308_v43 = vmul.f32 %v830_v35, %v1119_v0  ;;  %v894_v44 = vunpack.c.l.bf16 %v1029_v31 }
  0x27   : > { %v472_v45 = vmax.f32 %v440_v36, 0.0  ;;  %v441_v46 = vadd.f32 %v890_v21, %v345_v37  ;;  %v442_v47 = vadd.f32 %v891_v30, %v346_v38  ;;  %v309_v48 = vmul.f32 %v831_v39, %v1119_v0  ;;  %v1019_v38 = vld [vmem:[%s1108_s21 + $0x60] sm:$0xff]  }
  0x28   : > { %1041 = vst [vmem:[%s1153_s5 + $0x20] sm:$0xff] %v951_v41   ;;  %v347_v50 = vadd.f32 %v1130_v11, %v308_v43  ;;  %v895_v51 = vunpack.c.h.bf16 %v1029_v31  ;;  %v834_v52 = vunpack.c.l.bf16 %v1015_v40  ;;  %v835_v53 = vunpack.c.h.bf16 %v1015_v40  ;;  %v1034_v43 = vld [vmem:[%s1114_s24 + $0x60] sm:$0xff]  }
  0x29   : > { %v956_v55 = vpack.c.bf16 %v472_v45, %v471_v42  ;;  %v473_v56 = vmax.f32 %v441_v46, 0.0  ;;  %v474_v57 = vmax.f32 %v442_v47, 0.0  ;;  %v348_v58 = vadd.f32 %v1130_v11, %v309_v48 }
  0x2a   : > { %v443_v59 = vadd.f32 %v894_v44, %v347_v50  ;;  %v310_v60 = vmul.f32 %v834_v52, %v1119_v0  ;;  %v311_v61 = vmul.f32 %v835_v53, %v1119_v0  ;;  %v898_v62 = vunpack.c.l.bf16 %v1030_v49  ;;  %v1020_v52 = vld [vmem:[%s1108_s21 + $0x68] sm:$0xff]  }
  0x2b   : > { %1042 = vst [vmem:[%s1153_s5 + $0x28] sm:$0xff] %v956_v55   ;;  %v961_v1 = vpack.c.bf16 %v474_v57, %v473_v56  ;;  %v444_v2 = vadd.f32 %v895_v51, %v348_v58  ;;  %v899_v3 = vunpack.c.h.bf16 %v1030_v49  ;;  %v838_v4 = vunpack.c.l.bf16 %v1016_v54 }
  0x2c   : > { %v475_v6 = vmax.f32 %v443_v59, 0.0  ;;  %v349_v7 = vadd.f32 %v1130_v11, %v310_v60  ;;  %v350_v8 = vadd.f32 %v1130_v11, %v311_v61  ;;  %v839_v9 = vunpack.c.h.bf16 %v1016_v54  ;;  %v1035_v61 = vld [vmem:[%s1114_s24 + $0x68] sm:$0xff]  }
  0x2d   : > { %1043 = vst [vmem:[%s1153_s5 + $0x30] sm:$0xff] %v961_v1   ;;  %v476_v12 = vmax.f32 %v444_v2, 0.0  ;;  %v312_v13 = vmul.f32 %v838_v4, %v1119_v0  ;;  %v902_v14 = vunpack.c.l.bf16 %v1031_v63  ;;  %v903_v15 = vunpack.c.h.bf16 %v1031_v63 }
  0x2e   : > { %v445_v16 = vadd.f32 %v898_v62, %v349_v7  ;;  %v446_v17 = vadd.f32 %v899_v3, %v350_v8  ;;  %v313_v18 = vmul.f32 %v839_v9, %v1119_v0  ;;  %v842_v19 = vunpack.c.l.bf16 %v1017_v5  ;;  %v1021_v3 = vld [vmem:[%s1108_s21 + $0x70] sm:$0xff]  }
  0x2f   : > { %v966_v21 = vpack.c.bf16 %v476_v12, %v475_v6  ;;  %v351_v22 = vadd.f32 %v1130_v11, %v312_v13  ;;  %v843_v23 = vunpack.c.h.bf16 %v1017_v5  ;;  %v906_v24 = vunpack.c.l.bf16 %v1032_v10  ;;  %v1036_v13 = vld [vmem:[%s1114_s24 + $0x70] sm:$0xff]  }
  0x30   : > { %v477_v25 = vmax.f32 %v445_v16, 0.0  ;;  %v478_v26 = vmax.f32 %v446_v17, 0.0  ;;  %v352_v27 = vadd.f32 %v1130_v11, %v313_v18  ;;  %v314_v28 = vmul.f32 %v842_v19, %v1119_v0 }
  0x31   : > { %1044 = vst [vmem:[%s1153_s5 + $0x38] sm:$0xff] %v966_v21   ;;  %v447_v30 = vadd.f32 %v902_v14, %v351_v22  ;;  %v315_v31 = vmul.f32 %v843_v23, %v1119_v0  ;;  %v907_v32 = vunpack.c.h.bf16 %v1032_v10  ;;  %v846_v33 = vunpack.c.l.bf16 %v1018_v20  ;;  %v1022_v22 = vld [vmem:[%s1108_s21 + $0x78] sm:$0xff]  }
  0x32   : > { %v971_v34 = vpack.c.bf16 %v478_v26, %v477_v25  ;;  %v448_v35 = vadd.f32 %v903_v15, %v352_v27  ;;  %v353_v36 = vadd.f32 %v1130_v11, %v314_v28  ;;  %v847_v37 = vunpack.c.h.bf16 %v1018_v20  ;;  %v1037_v27 = vld [vmem:[%s1114_s24 + $0x78] sm:$0xff]  }
  0x33   : > { %v479_v39 = vmax.f32 %v447_v30, 0.0  ;;  %v354_v40 = vadd.f32 %v1130_v11, %v315_v31  ;;  %v316_v41 = vmul.f32 %v846_v33, %v1119_v0  ;;  %v910_v42 = vunpack.c.l.bf16 %v1033_v29 }
  0x34   : > { %1045 = vst [vmem:[%s1153_s5 + $0x40] sm:$0xff] %v971_v34   ;;  %v480_v44 = vmax.f32 %v448_v35, 0.0  ;;  %v449_v45 = vadd.f32 %v906_v24, %v353_v36  ;;  %v317_v46 = vmul.f32 %v847_v37, %v1119_v0  ;;  %v911_v47 = vunpack.c.h.bf16 %v1033_v29 }
  0x35   : > { %v450_v48 = vadd.f32 %v907_v32, %v354_v40  ;;  %v355_v49 = vadd.f32 %v1130_v11, %v316_v41  ;;  %v850_v50 = vunpack.c.l.bf16 %v1019_v38  ;;  %v851_v51 = vunpack.c.h.bf16 %v1019_v38 }
  0x36   : > { %v976_v53 = vpack.c.bf16 %v480_v44, %v479_v39  ;;  %v481_v54 = vmax.f32 %v449_v45, 0.0  ;;  %v356_v55 = vadd.f32 %v1130_v11, %v317_v46  ;;  %v914_v56 = vunpack.c.l.bf16 %v1034_v43 }
  0x37   : > { %v482_v57 = vmax.f32 %v450_v48, 0.0  ;;  %v451_v58 = vadd.f32 %v910_v42, %v355_v49  ;;  %v318_v59 = vmul.f32 %v850_v50, %v1119_v0  ;;  %v319_v60 = vmul.f32 %v851_v51, %v1119_v0 }
  0x38   : > { %1046 = vst [vmem:[%s1153_s5 + $0x48] sm:$0xff] %v976_v53   ;;  %v452_v62 = vadd.f32 %v911_v47, %v356_v55  ;;  %v915_v63 = vunpack.c.h.bf16 %v1034_v43  ;;  %v854_v1 = vunpack.c.l.bf16 %v1020_v52  ;;  %v855_v2 = vunpack.c.h.bf16 %v1020_v52 }
  0x39   : > { %v981_v4 = vpack.c.bf16 %v482_v57, %v481_v54  ;;  %v483_v5 = vmax.f32 %v451_v58, 0.0  ;;  %v357_v6 = vadd.f32 %v1130_v11, %v318_v59  ;;  %v358_v7 = vadd.f32 %v1130_v11, %v319_v60 }
  0x3a   : > { %v484_v8 = vmax.f32 %v452_v62, 0.0  ;;  %v320_v9 = vmul.f32 %v854_v1, %v1119_v0  ;;  %v321_v10 = vmul.f32 %v855_v2, %v1119_v0  ;;  %v918_v12 = vunpack.c.l.bf16 %v1035_v61 }
  0x3b   : > { %1047 = vst [vmem:[%s1153_s5 + $0x50] sm:$0xff] %v981_v4   ;;  %v453_v14 = vadd.f32 %v914_v56, %v357_v6  ;;  %v454_v15 = vadd.f32 %v915_v63, %v358_v7  ;;  %v919_v16 = vunpack.c.h.bf16 %v1035_v61  ;;  %v858_v17 = vunpack.c.l.bf16 %v1021_v3 }
  0x3c   : > { %v986_v18 = vpack.c.bf16 %v484_v8, %v483_v5  ;;  %v359_v19 = vadd.f32 %v1130_v11, %v320_v9  ;;  %v360_v20 = vadd.f32 %v1130_v11, %v321_v10  ;;  %v859_v21 = vunpack.c.h.bf16 %v1021_v3 }
  0x3d   : > { %v485_v23 = vmax.f32 %v453_v14, 0.0  ;;  %v486_v24 = vmax.f32 %v454_v15, 0.0  ;;  %v322_v25 = vmul.f32 %v858_v17, %v1119_v0  ;;  %v922_v26 = vunpack.c.l.bf16 %v1036_v13 }
  0x3e   : > { %1048 = vst [vmem:[%s1153_s5 + $0x58] sm:$0xff] %v986_v18   ;;  %v455_v28 = vadd.f32 %v918_v12, %v359_v19  ;;  %v456_v29 = vadd.f32 %v919_v16, %v360_v20  ;;  %v323_v30 = vmul.f32 %v859_v21, %v1119_v0  ;;  %v923_v31 = vunpack.c.h.bf16 %v1036_v13 }
  0x3f   : > { %v991_v32 = vpack.c.bf16 %v486_v24, %v485_v23  ;;  %v361_v33 = vadd.f32 %v1130_v11, %v322_v25  ;;  %v862_v34 = vunpack.c.l.bf16 %v1022_v22  ;;  %v863_v35 = vunpack.c.h.bf16 %v1022_v22 }
  0x40   : > { %v487_v36 = vmax.f32 %v455_v28, 0.0  ;;  %v488_v37 = vmax.f32 %v456_v29, 0.0  ;;  %v362_v38 = vadd.f32 %v1130_v11, %v323_v30  ;;  %v926_v39 = vunpack.c.l.bf16 %v1037_v27 }
  0x41   : > { %1049 = vst [vmem:[%s1153_s5 + $0x60] sm:$0xff] %v991_v32   ;;  %v457_v40 = vadd.f32 %v922_v26, %v361_v33  ;;  %v324_v41 = vmul.f32 %v862_v34, %v1119_v0  ;;  %v325_v42 = vmul.f32 %v863_v35, %v1119_v0  ;;  %v927_v43 = vunpack.c.h.bf16 %v1037_v27 }
  0x42   : > { %v996_v44 = vpack.c.bf16 %v488_v37, %v487_v36  ;;  %v458_v45 = vadd.f32 %v923_v31, %v362_v38 }
  0x43   : > { %v489_v46 = vmax.f32 %v457_v40, 0.0  ;;  %v363_v47 = vadd.f32 %v1130_v11, %v324_v41  ;;  %v364_v48 = vadd.f32 %v1130_v11, %v325_v42 }
  0x44   : > { %1050 = vst [vmem:[%s1153_s5 + $0x68] sm:$0xff] %v996_v44   ;;  %v490_v49 = vmax.f32 %v458_v45, 0.0 }
  0x45   : > { %v459_v50 = vadd.f32 %v926_v39, %v363_v47  ;;  %v460_v51 = vadd.f32 %v927_v43, %v364_v48 }
  0x46   : > { %v1001_v52 = vpack.c.bf16 %v490_v49, %v489_v46 }
  0x47   : > { %v491_v53 = vmax.f32 %v459_v50, 0.0  ;;  %v492_v54 = vmax.f32 %v460_v51, 0.0 }
  0x48   : > { %1051 = vst [vmem:[%s1153_s5 + $0x70] sm:$0xff] %v1001_v52  }
  0x49   : > { %v1006_v55 = vpack.c.bf16 %v492_v54, %v491_v53 }
  0x4b   : > { %1052 = vst [vmem:[%s1153_s5 + $0x78] sm:$0xff] %v1006_v55  }
  0x4c PF: > { %s14_s15 = sadd.s32 1, %s1067_s15  }
  0x4d   : > { %p11_p4 = scmp.ge.s32.totalorder %s14_s15, 4  }
  0x4f   :  { %13 = sbr.rel (!%p11_p4) target bundleno = 1 (0x1), region = 69 }

</bundles_post_ra>
